<compile_context>
chip_gen: v7x
topology: tpu7x:2x2x1
jax: 0.10.0
libtpu: 0.0.40
codegen_flags: <defaults>
</compile_context>

<pallas_src>
import functools

import jax
import jax.numpy as jnp
from jax import lax
from jax.experimental import pallas as pl
from jax.experimental.pallas import tpu as pltpu


def _encoder_kernel(
    x_ref,                         # (1, S, D)   input activations (read at layer 0)
    ln1_g_ref, ln1_b_ref,          # (1, 1, D)
    wq_ref, bq_ref,                # (1, H, D, hd), (1, H, 1, hd)
    wk_ref, bk_ref,                # (1, H, D, hd), (1, H, 1, hd)
    wv_ref, bv_ref,                # (1, H, D, hd), (1, H, 1, hd)
    wo_ref, bo_ref,                # (1, H, hd, D), (1, 1, D)
    ln2_g_ref, ln2_b_ref,          # (1, 1, D)
    w1_ref, b1_ref,                # (1, D, F), (1, 1, F)
    w2_ref, b2_ref,                # (1, F, D), (1, 1, D)
    o_ref,                         # (1, S, D)   written at the last layer only
    acc_ref,                       # VMEM (S, D) f32 -- resident activation
    *, num_heads: int,
):
    layer = pl.program_id(1)
    last_layer = pl.num_programs(1) - 1

    # Load the input activation into the resident f32 accumulator once per
    # batch element (layer 0 of each batch grid step).
    @pl.when(layer == 0)
    def _load_input():
        acc_ref[...] = x_ref[0].astype(jnp.float32)

    x = acc_ref[...]                       # (S, D) f32
    S, D = x.shape
    H = num_heads
    hd = D // H
    scale = 1.0 / (hd ** 0.5)
    wdtype = wq_ref.dtype                  # matmul operand dtype (bf16)

    def layernorm(v, g, b):
        mu = jnp.mean(v, axis=-1, keepdims=True)
        var = jnp.mean(jnp.square(v - mu), axis=-1, keepdims=True)
        return (v - mu) * lax.rsqrt(var + 1e-5) * g + b

    # ---------------- multi-head self-attention ----------------
    h = layernorm(x, ln1_g_ref[0], ln1_b_ref[0])               # (S, D) f32
    hb = jnp.broadcast_to(h.astype(wdtype), (H, S, D))          # (H, S, D)

    q = jnp.einsum('hsd,hdf->hsf', hb, wq_ref[0],
                   preferred_element_type=jnp.float32) + bq_ref[0]   # (H, S, hd)
    k = jnp.einsum('hsd,hdf->hsf', hb, wk_ref[0],
                   preferred_element_type=jnp.float32) + bk_ref[0]   # (H, S, hd)
    v = jnp.einsum('hsd,hdf->hsf', hb, wv_ref[0],
                   preferred_element_type=jnp.float32) + bv_ref[0]   # (H, S, hd)

    scores = jnp.einsum('hqf,hkf->hqk', q.astype(wdtype), k.astype(wdtype),
                        preferred_element_type=jnp.float32) * scale  # (H, S, S)
    scores = scores - jnp.max(scores, axis=-1, keepdims=True)
    p = jnp.exp(scores)
    p = p * pl.reciprocal(jnp.sum(p, axis=-1, keepdims=True), approx=True)

    ctx = jnp.einsum('hqk,hkf->hqf', p.astype(wdtype), v.astype(wdtype),
                     preferred_element_type=jnp.float32)             # (H, S, hd)
    # Per-head projection through wo, summed over heads == concat(heads) @ Wo.
    proj_heads = jnp.einsum('hsf,hfd->hsd', ctx.astype(wdtype), wo_ref[0],
                            preferred_element_type=jnp.float32)      # (H, S, D)
    attn = jnp.sum(proj_heads, axis=0) + bo_ref[0]                   # (S, D)
    # TODO(synk): dropout omitted (inference semantics / identity).
    x = x + attn

    # ---------------- MLP ----------------
    h = layernorm(x, ln2_g_ref[0], ln2_b_ref[0])
    h1 = jnp.dot(h.astype(wdtype), w1_ref[0],
                 preferred_element_type=jnp.float32) + b1_ref[0]     # (S, F)
    c = jnp.float32(0.7978845608028654)   # sqrt(2/pi) -- tanh-approx GELU
    # TODO(synk): PyTorch nn.GELU() default is the exact erf form; tanh approx used here.
    g = 0.5 * h1 * (1.0 + jnp.tanh(c * (h1 + 0.044715 * h1 * h1 * h1)))
    h2 = jnp.dot(g.astype(wdtype), w2_ref[0],
                 preferred_element_type=jnp.float32) + b2_ref[0]     # (S, D)
    x = x + h2

    acc_ref[...] = x

    @pl.when(layer == last_layer)
    def _store_output():
        o_ref[0] = x.astype(o_ref.dtype)


_WEIGHT_ORDER = [
    "ln1_g", "ln1_b", "wq", "bq", "wk", "bk", "wv", "bv",
    "wo", "bo", "ln2_g", "ln2_b", "w1", "b1", "w2", "b2",
]


def encoder_forward(x, params, *, num_heads):
    """Encoder.forward: `depth` transformer blocks fused into one pallas_call.

    x: (B, S, D) float32.  params: dict of depth-stacked arrays (see
    init_encoder_params).
    """
    B, S, D = x.shape
    assert D % num_heads == 0
    depth = params["wq"].shape[0]
    weights = [params[n] for n in _WEIGHT_ORDER]

    def stacked_spec(a):
        nrest = a.ndim - 1
        return pl.BlockSpec((1,) + a.shape[1:],
                            lambda b, l, _n=nrest: (l,) + (0,) * _n)

    in_specs = [pl.BlockSpec((1, S, D), lambda b, l: (b, 0, 0))]
    in_specs += [stacked_spec(w) for w in weights]
    out_specs = pl.BlockSpec((1, S, D), lambda b, l: (b, 0, 0))

    # Rough VMEM budget: double-buffered per-layer weights + activations.
    per_layer_w_bytes = sum(int(w.size) * w.dtype.itemsize for w in weights) // depth
    vmem_limit = min(64 << 20, max(32 << 20, 4 * per_layer_w_bytes + (1 << 20)))

    kernel = functools.partial(_encoder_kernel, num_heads=num_heads)

    return pl.pallas_call(
        kernel,
        out_shape=jax.ShapeDtypeStruct((B, S, D), x.dtype),
        grid_spec=pltpu.PrefetchScalarGridSpec(
            num_scalar_prefetch=0,
            grid=(B, depth),                 # batch outer/parallel, depth inner/serial
            in_specs=in_specs,
            out_specs=out_specs,
            scratch_shapes=[pltpu.VMEM((S, D), jnp.float32)],
        ),
        compiler_params=pltpu.CompilerParams(
            dimension_semantics=("parallel", "arbitrary"),
            vmem_limit_bytes=vmem_limit,
        ),
    )(x, *weights)


def init_encoder_params(key, *, embed_dim, num_heads, depth, mlp_ratio=4,
                        param_dtype=jnp.bfloat16):
    """Deterministic synthetic parameters, depth-stacked and head-major laid out."""
    D, H = embed_dim, num_heads
    hd = D // H
    F = mlp_ratio * D
    ks = jax.random.split(key, 10)

    def w(k, shape):
        return 0.02 * jax.random.normal(k, shape, jnp.float32)

    def b(k, shape):
        return 0.01 * jax.random.normal(k, shape, jnp.float32)

    # Head-major weight layouts so the kernel never lane-slices q/k/v.
    wq = w(ks[0], (depth, D, D)).reshape(depth, D, H, hd).transpose(0, 2, 1, 3)
    wk = w(ks[1], (depth, D, D)).reshape(depth, D, H, hd).transpose(0, 2, 1, 3)
    wv = w(ks[2], (depth, D, D)).reshape(depth, D, H, hd).transpose(0, 2, 1, 3)
    wo = w(ks[3], (depth, D, D)).reshape(depth, H, hd, D)

    return dict(
        ln1_g=jnp.ones((depth, 1, D), jnp.float32),
        ln1_b=jnp.zeros((depth, 1, D), jnp.float32),
        wq=wq.astype(param_dtype), bq=b(ks[4], (depth, H, 1, hd)),
        wk=wk.astype(param_dtype), bk=b(ks[5], (depth, H, 1, hd)),
        wv=wv.astype(param_dtype), bv=b(ks[6], (depth, H, 1, hd)),
        wo=wo.astype(param_dtype), bo=b(ks[7], (depth, 1, D)),
        ln2_g=jnp.ones((depth, 1, D), jnp.float32),
        ln2_b=jnp.zeros((depth, 1, D), jnp.float32),
        w1=w(ks[8], (depth, D, F)).astype(param_dtype),
        b1=jnp.zeros((depth, 1, F), jnp.float32),
        w2=w(ks[9], (depth, F, D)).astype(param_dtype),
        b2=jnp.zeros((depth, 1, D), jnp.float32),
    )


def encoder_reference(x, params, *, num_heads):
    """Pure-JAX reference of the same fused forward (for correctness check)."""
    depth = params["wq"].shape[0]
    hd = x.shape[-1] // num_heads
    x = x.astype(jnp.float32)

    def ln(v, g, b):
        mu = jnp.mean(v, axis=-1, keepdims=True)
        var = jnp.mean(jnp.square(v - mu), axis=-1, keepdims=True)
        return (v - mu) * lax.rsqrt(var + 1e-5) * g + b

    for i in range(depth):
        p = {k: v[i] for k, v in params.items()}
        wd = p["wq"].dtype
        h = ln(x, p["ln1_g"], p["ln1_b"])
        q = jnp.einsum('bsd,hdf->bhsf', h.astype(wd), p["wq"],
                       preferred_element_type=jnp.float32) + p["bq"][None]
        k = jnp.einsum('bsd,hdf->bhsf', h.astype(wd), p["wk"],
                       preferred_element_type=jnp.float32) + p["bk"][None]
        v = jnp.einsum('bsd,hdf->bhsf', h.astype(wd), p["wv"],
                       preferred_element_type=jnp.float32) + p["bv"][None]
        s = jnp.einsum('bhqf,bhkf->bhqk', q.astype(wd), k.astype(wd),
                       preferred_element_type=jnp.float32) * (1.0 / (hd ** 0.5))
        s = s - jnp.max(s, axis=-1, keepdims=True)
        e = jnp.exp(s)
        a = e / jnp.sum(e, axis=-1, keepdims=True)
        ctx = jnp.einsum('bhqk,bhkf->bhqf', a.astype(wd), v.astype(wd),
                         preferred_element_type=jnp.float32)
        attn = jnp.einsum('bhsf,hfd->bsd', ctx.astype(wd), p["wo"],
                          preferred_element_type=jnp.float32) + p["bo"]
        x = x + attn
        h = ln(x, p["ln2_g"], p["ln2_b"])
        h1 = jnp.einsum('bsd,df->bsf', h.astype(wd), p["w1"],
                        preferred_element_type=jnp.float32) + p["b1"]
        g = 0.5 * h1 * (1.0 + jnp.tanh(0.7978845608028654 *
                                       (h1 + 0.044715 * h1 * h1 * h1)))
        h2 = jnp.einsum('bsf,fd->bsd', g.astype(wd), p["w2"],
                        preferred_element_type=jnp.float32) + p["b2"]
        x = x + h2
    return x


if __name__ == "__main__":
    # Encoder(embed_dim=32, num_heads=4, dropout=0.0, bias=True, depth=2)
    EMBED_DIM = 32
    NUM_HEADS = 4
    DEPTH = 2
    BATCH = 2
    SEQ = 8

    key = jax.random.PRNGKey(0)
    k_x, k_p = jax.random.split(key)

    hidden_states = jax.random.normal(k_x, (BATCH, SEQ, EMBED_DIM), jnp.float32)
    params = init_encoder_params(k_p, embed_dim=EMBED_DIM, num_heads=NUM_HEADS,
                                 depth=DEPTH)

    out = encoder_forward(hidden_states, params, num_heads=NUM_HEADS)
    out = jax.block_until_ready(out)

    assert out.shape == (BATCH, SEQ, EMBED_DIM)
    assert out.dtype == jnp.float32
    assert bool(jnp.all(jnp.isfinite(out)))

    ref = encoder_reference(hidden_states, params, num_heads=NUM_HEADS)
    assert bool(jnp.allclose(out, ref, atol=2e-2, rtol=2e-2))

    print("KERNEL_OK")
</pallas_src>

<mosaic_0001>
module attributes {stable_mosaic.version = 11 : i64} {
  func.func @_encoder_kernel(%arg0: i32, %arg1: i32, %arg2: memref<1x8x32xf32, #tpu.memory_space<vmem>>, %arg3: memref<1x1x32xf32, #tpu.memory_space<vmem>>, %arg4: memref<1x1x32xf32, #tpu.memory_space<vmem>>, %arg5: memref<1x4x32x8xbf16, #tpu.memory_space<vmem>>, %arg6: memref<1x4x1x8xf32, #tpu.memory_space<vmem>>, %arg7: memref<1x4x32x8xbf16, #tpu.memory_space<vmem>>, %arg8: memref<1x4x1x8xf32, #tpu.memory_space<vmem>>, %arg9: memref<1x4x32x8xbf16, #tpu.memory_space<vmem>>, %arg10: memref<1x4x1x8xf32, #tpu.memory_space<vmem>>, %arg11: memref<1x4x8x32xbf16, #tpu.memory_space<vmem>>, %arg12: memref<1x1x32xf32, #tpu.memory_space<vmem>>, %arg13: memref<1x1x32xf32, #tpu.memory_space<vmem>>, %arg14: memref<1x1x32xf32, #tpu.memory_space<vmem>>, %arg15: memref<1x32x128xbf16, #tpu.memory_space<vmem>>, %arg16: memref<1x1x128xf32, #tpu.memory_space<vmem>>, %arg17: memref<1x128x32xbf16, #tpu.memory_space<vmem>>, %arg18: memref<1x1x32xf32, #tpu.memory_space<vmem>>, %arg19: memref<1x8x32xf32, #tpu.memory_space<vmem>>, %arg20: memref<8x32xf32, #tpu.memory_space<vmem>>) attributes {dimension_semantics = [#tpu.dimension_semantics<parallel>, #tpu.dimension_semantics<arbitrary>], iteration_bounds = array<i64: 2, 2>, scalar_prefetch = 0 : i64, scratch_operands = 1 : i64, tpu.core_type = #tpu.core_type<tc>, window_params = [{transform_indices = @transform_0, window_bounds = array<i64: 1, 8, 32>}, {transform_indices = @transform_1, window_bounds = array<i64: 1, 1, 32>}, {transform_indices = @transform_2, window_bounds = array<i64: 1, 1, 32>}, {transform_indices = @transform_3, window_bounds = array<i64: 1, 4, 32, 8>}, {transform_indices = @transform_4, window_bounds = array<i64: 1, 4, 1, 8>}, {transform_indices = @transform_5, window_bounds = array<i64: 1, 4, 32, 8>}, {transform_indices = @transform_6, window_bounds = array<i64: 1, 4, 1, 8>}, {transform_indices = @transform_7, window_bounds = array<i64: 1, 4, 32, 8>}, {transform_indices = @transform_8, window_bounds = array<i64: 1, 4, 1, 8>}, {transform_indices = @transform_9, window_bounds = array<i64: 1, 4, 8, 32>}, {transform_indices = @transform_10, window_bounds = array<i64: 1, 1, 32>}, {transform_indices = @transform_11, window_bounds = array<i64: 1, 1, 32>}, {transform_indices = @transform_12, window_bounds = array<i64: 1, 1, 32>}, {transform_indices = @transform_13, window_bounds = array<i64: 1, 32, 128>}, {transform_indices = @transform_14, window_bounds = array<i64: 1, 1, 128>}, {transform_indices = @transform_15, window_bounds = array<i64: 1, 128, 32>}, {transform_indices = @transform_16, window_bounds = array<i64: 1, 1, 32>}, {transform_indices = @transform_17, window_bounds = array<i64: 1, 8, 32>}]} {
    %c0_i32 = arith.constant 0 : i32
    %0 = arith.cmpi eq, %arg1, %c0_i32 : i32
    %1 = arith.extui %0 : i1 to i32
    %c0_i32_0 = arith.constant 0 : i32
    %2 = arith.cmpi ne, %1, %c0_i32_0 : i32
    scf.if %2 {
      %c0_85 = arith.constant 0 : index
      %c0_86 = arith.constant 0 : index
      %c0_87 = arith.constant 0 : index
      %142 = vector.load %arg2[%c0_85, %c0_86, %c0_87] : memref<1x8x32xf32, #tpu.memory_space<vmem>>, vector<1x8x32xf32>
      %143 = vector.shape_cast %142 : vector<1x8x32xf32> to vector<8x32xf32>
      %c0_88 = arith.constant 0 : index
      %c0_89 = arith.constant 0 : index
      %144 = vector.load %arg20[%c0_88, %c0_89] : memref<8x32xf32, #tpu.memory_space<vmem>>, vector<8x32xf32>
      tpu.vector_store %arg20[%c0_88, %c0_89], %143 {strides = array<i32>} : memref<8x32xf32, #tpu.memory_space<vmem>>, vector<8x32xf32>,
    } else {
    }
    %c0 = arith.constant 0 : index
    %c0_1 = arith.constant 0 : index
    %3 = vector.load %arg20[%c0, %c0_1] : memref<8x32xf32, #tpu.memory_space<vmem>>, vector<8x32xf32>
    %c0_2 = arith.constant 0 : index
    %c0_3 = arith.constant 0 : index
    %c0_4 = arith.constant 0 : index
    %4 = vector.load %arg3[%c0_2, %c0_3, %c0_4] : memref<1x1x32xf32, #tpu.memory_space<vmem>>, vector<1x1x32xf32>
    %5 = vector.shape_cast %4 : vector<1x1x32xf32> to vector<1x32xf32>
    %c0_5 = arith.constant 0 : index
    %c0_6 = arith.constant 0 : index
    %c0_7 = arith.constant 0 : index
    %6 = vector.load %arg4[%c0_5, %c0_6, %c0_7] : memref<1x1x32xf32, #tpu.memory_space<vmem>>, vector<1x1x32xf32>
    %7 = vector.shape_cast %6 : vector<1x1x32xf32> to vector<1x32xf32>
    %cst = arith.constant dense<0.000000e+00> : vector<8xf32>
    %8 = vector.multi_reduction <add>, %3, %cst [1] : vector<8x32xf32> to vector<8xf32>
    %9 = vector.shape_cast %8 : vector<8xf32> to vector<8x1xf32>
    %cst_8 = arith.constant 3.200000e+01 : f32
    %10 = vector.broadcast %cst_8 : f32 to vector<8x1xf32>
    %11 = arith.divf %9, %10 : vector<8x1xf32>
    %12 = vector.broadcast %11 : vector<8x1xf32> to vector<8x32xf32>
    %13 = arith.subf %3, %12 : vector<8x32xf32>
    %14 = arith.mulf %13, %13 : vector<8x32xf32>
    %cst_9 = arith.constant dense<0.000000e+00> : vector<8xf32>
    %15 = vector.multi_reduction <add>, %14, %cst_9 [1] : vector<8x32xf32> to vector<8xf32>
    %16 = vector.shape_cast %15 : vector<8xf32> to vector<8x1xf32>
    %cst_10 = arith.constant 3.200000e+01 : f32
    %17 = vector.broadcast %cst_10 : f32 to vector<8x1xf32>
    %18 = arith.divf %16, %17 : vector<8x1xf32>
    %19 = vector.broadcast %11 : vector<8x1xf32> to vector<8x32xf32>
    %20 = arith.subf %3, %19 : vector<8x32xf32>
    %cst_11 = arith.constant 9.99999974E-6 : f32
    %21 = vector.broadcast %cst_11 : f32 to vector<8x1xf32>
    %22 = arith.addf %18, %21 : vector<8x1xf32>
    %23 = math.rsqrt %22 : vector<8x1xf32>
    %24 = vector.broadcast %23 : vector<8x1xf32> to vector<8x32xf32>
    %25 = arith.mulf %20, %24 : vector<8x32xf32>
    %26 = vector.broadcast %5 : vector<1x32xf32> to vector<8x32xf32>
    %27 = arith.mulf %25, %26 : vector<8x32xf32>
    %28 = vector.broadcast %7 : vector<1x32xf32> to vector<8x32xf32>
    %29 = arith.addf %27, %28 : vector<8x32xf32>
    %30 = arith.truncf %29 : vector<8x32xf32> to vector<8x32xbf16>
    %31 = vector.shape_cast %30 : vector<8x32xbf16> to vector<1x8x32xbf16>
    %32 = vector.broadcast %31 : vector<1x8x32xbf16> to vector<4x8x32xbf16>
    %c0_12 = arith.constant 0 : index
    %c0_13 = arith.constant 0 : index
    %c0_14 = arith.constant 0 : index
    %c0_15 = arith.constant 0 : index
    %33 = vector.load %arg5[%c0_12, %c0_13, %c0_14, %c0_15] : memref<1x4x32x8xbf16, #tpu.memory_space<vmem>>, vector<1x4x32x8xbf16>
    %34 = vector.shape_cast %33 : vector<1x4x32x8xbf16> to vector<4x32x8xbf16>
    "tpu.trace_start"() <{level = 10 : i32, message = "hsd,hdf->hsf"}> : () -> ()
    %cst_16 = arith.constant dense<0.000000e+00> : vector<4x8x8xf32>
    %35 = tpu.matmul %32, %34, %cst_16 {dimension_numbers = #tpu.dot_dimension_numbers<[2], [1], [1], [2], [0, 0, 0, 1, 1, 2], [0], [0]>} : vector<4x8x32xbf16>, vector<4x32x8xbf16>, vector<4x8x8xf32> -> vector<4x8x8xf32>
    "tpu.trace_stop"() : () -> ()
    %c0_17 = arith.constant 0 : index
    %c0_18 = arith.constant 0 : index
    %c0_19 = arith.constant 0 : index
    %c0_20 = arith.constant 0 : index
    %36 = vector.load %arg6[%c0_17, %c0_18, %c0_19, %c0_20] : memref<1x4x1x8xf32, #tpu.memory_space<vmem>>, vector<1x4x1x8xf32>
    %37 = vector.shape_cast %36 : vector<1x4x1x8xf32> to vector<4x1x8xf32>
    %38 = vector.broadcast %37 : vector<4x1x8xf32> to vector<4x8x8xf32>
    %39 = arith.addf %35, %38 : vector<4x8x8xf32>
    %c0_21 = arith.constant 0 : index
    %c0_22 = arith.constant 0 : index
    %c0_23 = arith.constant 0 : index
    %c0_24 = arith.constant 0 : index
    %40 = vector.load %arg7[%c0_21, %c0_22, %c0_23, %c0_24] : memref<1x4x32x8xbf16, #tpu.memory_space<vmem>>, vector<1x4x32x8xbf16>
    %41 = vector.shape_cast %40 : vector<1x4x32x8xbf16> to vector<4x32x8xbf16>
    "tpu.trace_start"() <{level = 10 : i32, message = "hsd,hdf->hsf"}> : () -> ()
    %cst_25 = arith.constant dense<0.000000e+00> : vector<4x8x8xf32>
    %42 = tpu.matmul %32, %41, %cst_25 {dimension_numbers = #tpu.dot_dimension_numbers<[2], [1], [1], [2], [0, 0, 0, 1, 1, 2], [0], [0]>} : vector<4x8x32xbf16>, vector<4x32x8xbf16>, vector<4x8x8xf32> -> vector<4x8x8xf32>
    "tpu.trace_stop"() : () -> ()
    %c0_26 = arith.constant 0 : index
    %c0_27 = arith.constant 0 : index
    %c0_28 = arith.constant 0 : index
    %c0_29 = arith.constant 0 : index
    %43 = vector.load %arg8[%c0_26, %c0_27, %c0_28, %c0_29] : memref<1x4x1x8xf32, #tpu.memory_space<vmem>>, vector<1x4x1x8xf32>
    %44 = vector.shape_cast %43 : vector<1x4x1x8xf32> to vector<4x1x8xf32>
    %45 = vector.broadcast %44 : vector<4x1x8xf32> to vector<4x8x8xf32>
    %46 = arith.addf %42, %45 : vector<4x8x8xf32>
    %c0_30 = arith.constant 0 : index
    %c0_31 = arith.constant 0 : index
    %c0_32 = arith.constant 0 : index
    %c0_33 = arith.constant 0 : index
    %47 = vector.load %arg9[%c0_30, %c0_31, %c0_32, %c0_33] : memref<1x4x32x8xbf16, #tpu.memory_space<vmem>>, vector<1x4x32x8xbf16>
    %48 = vector.shape_cast %47 : vector<1x4x32x8xbf16> to vector<4x32x8xbf16>
    "tpu.trace_start"() <{level = 10 : i32, message = "hsd,hdf->hsf"}> : () -> ()
    %cst_34 = arith.constant dense<0.000000e+00> : vector<4x8x8xf32>
    %49 = tpu.matmul %32, %48, %cst_34 {dimension_numbers = #tpu.dot_dimension_numbers<[2], [1], [1], [2], [0, 0, 0, 1, 1, 2], [0], [0]>} : vector<4x8x32xbf16>, vector<4x32x8xbf16>, vector<4x8x8xf32> -> vector<4x8x8xf32>
    "tpu.trace_stop"() : () -> ()
    %c0_35 = arith.constant 0 : index
    %c0_36 = arith.constant 0 : index
    %c0_37 = arith.constant 0 : index
    %c0_38 = arith.constant 0 : index
    %50 = vector.load %arg10[%c0_35, %c0_36, %c0_37, %c0_38] : memref<1x4x1x8xf32, #tpu.memory_space<vmem>>, vector<1x4x1x8xf32>
    %51 = vector.shape_cast %50 : vector<1x4x1x8xf32> to vector<4x1x8xf32>
    %52 = vector.broadcast %51 : vector<4x1x8xf32> to vector<4x8x8xf32>
    %53 = arith.addf %49, %52 : vector<4x8x8xf32>
    %54 = arith.truncf %39 : vector<4x8x8xf32> to vector<4x8x8xbf16>
    %55 = arith.truncf %46 : vector<4x8x8xf32> to vector<4x8x8xbf16>
    "tpu.trace_start"() <{level = 10 : i32, message = "hqf,hkf->hqk"}> : () -> ()
    %cst_39 = arith.constant dense<0.000000e+00> : vector<4x8x8xf32>
    %56 = tpu.matmul %54, %55, %cst_39 {dimension_numbers = #tpu.dot_dimension_numbers<[2], [2], [1], [1], [0, 0, 0, 1, 1, 1], [0], [0]>} : vector<4x8x8xbf16>, vector<4x8x8xbf16>, vector<4x8x8xf32> -> vector<4x8x8xf32>
    "tpu.trace_stop"() : () -> ()
    %cst_40 = arith.constant 0.353553385 : f32
    %57 = vector.broadcast %cst_40 : f32 to vector<4x8x8xf32>
    %58 = arith.mulf %56, %57 : vector<4x8x8xf32>
    %cst_41 = arith.constant dense<0xFF800000> : vector<4x8xf32>
    %59 = vector.multi_reduction <maximumf>, %58, %cst_41 [2] : vector<4x8x8xf32> to vector<4x8xf32>
    %60 = vector.shape_cast %59 : vector<4x8xf32> to vector<4x8x1xf32>
    %61 = vector.broadcast %60 : vector<4x8x1xf32> to vector<4x8x8xf32>
    %62 = arith.subf %58, %61 : vector<4x8x8xf32>
    %63 = math.exp %62 : vector<4x8x8xf32>
    %cst_42 = arith.constant dense<0.000000e+00> : vector<4x8xf32>
    %64 = vector.multi_reduction <add>, %63, %cst_42 [2] : vector<4x8x8xf32> to vector<4x8xf32>
    %65 = vector.shape_cast %64 : vector<4x8xf32> to vector<4x8x1xf32>
    %66 = tpu.reciprocal %65 {approx = true} : vector<4x8x1xf32> -> vector<4x8x1xf32>
    %67 = vector.broadcast %66 : vector<4x8x1xf32> to vector<4x8x8xf32>
    %68 = arith.mulf %63, %67 : vector<4x8x8xf32>
    %69 = arith.truncf %68 : vector<4x8x8xf32> to vector<4x8x8xbf16>
    %70 = arith.truncf %53 : vector<4x8x8xf32> to vector<4x8x8xbf16>
    "tpu.trace_start"() <{level = 10 : i32, message = "hqk,hkf->hqf"}> : () -> ()
    %cst_43 = arith.constant dense<0.000000e+00> : vector<4x8x8xf32>
    %71 = tpu.matmul %69, %70, %cst_43 {dimension_numbers = #tpu.dot_dimension_numbers<[2], [1], [1], [2], [0, 0, 0, 1, 1, 2], [0], [0]>} : vector<4x8x8xbf16>, vector<4x8x8xbf16>, vector<4x8x8xf32> -> vector<4x8x8xf32>
    "tpu.trace_stop"() : () -> ()
    %72 = arith.truncf %71 : vector<4x8x8xf32> to vector<4x8x8xbf16>
    %c0_44 = arith.constant 0 : index
    %c0_45 = arith.constant 0 : index
    %c0_46 = arith.constant 0 : index
    %c0_47 = arith.constant 0 : index
    %73 = vector.load %arg11[%c0_44, %c0_45, %c0_46, %c0_47] : memref<1x4x8x32xbf16, #tpu.memory_space<vmem>>, vector<1x4x8x32xbf16>
    %74 = vector.shape_cast %73 : vector<1x4x8x32xbf16> to vector<4x8x32xbf16>
    "tpu.trace_start"() <{level = 10 : i32, message = "hsf,hfd->hsd"}> : () -> ()
    %cst_48 = arith.constant dense<0.000000e+00> : vector<4x8x32xf32>
    %75 = tpu.matmul %72, %74, %cst_48 {dimension_numbers = #tpu.dot_dimension_numbers<[2], [1], [1], [2], [0, 0, 0, 1, 1, 2], [0], [0]>} : vector<4x8x8xbf16>, vector<4x8x32xbf16>, vector<4x8x32xf32> -> vector<4x8x32xf32>
    "tpu.trace_stop"() : () -> ()
    %cst_49 = arith.constant dense<0.000000e+00> : vector<8x32xf32>
    %76 = vector.multi_reduction <add>, %75, %cst_49 [0] : vector<4x8x32xf32> to vector<8x32xf32>
    %c0_50 = arith.constant 0 : index
    %c0_51 = arith.constant 0 : index
    %c0_52 = arith.constant 0 : index
    %77 = vector.load %arg12[%c0_50, %c0_51, %c0_52] : memref<1x1x32xf32, #tpu.memory_space<vmem>>, vector<1x1x32xf32>
    %78 = vector.shape_cast %77 : vector<1x1x32xf32> to vector<1x32xf32>
    %79 = vector.broadcast %78 : vector<1x32xf32> to vector<8x32xf32>
    %80 = arith.addf %76, %79 : vector<8x32xf32>
    %81 = arith.addf %3, %80 : vector<8x32xf32>
    %c0_53 = arith.constant 0 : index
    %c0_54 = arith.constant 0 : index
    %c0_55 = arith.constant 0 : index
    %82 = vector.load %arg13[%c0_53, %c0_54, %c0_55] : memref<1x1x32xf32, #tpu.memory_space<vmem>>, vector<1x1x32xf32>
    %83 = vector.shape_cast %82 : vector<1x1x32xf32> to vector<1x32xf32>
    %c0_56 = arith.constant 0 : index
    %c0_57 = arith.constant 0 : index
    %c0_58 = arith.constant 0 : index
    %84 = vector.load %arg14[%c0_56, %c0_57, %c0_58] : memref<1x1x32xf32, #tpu.memory_space<vmem>>, vector<1x1x32xf32>
    %85 = vector.shape_cast %84 : vector<1x1x32xf32> to vector<1x32xf32>
    %cst_59 = arith.constant dense<0.000000e+00> : vector<8xf32>
    %86 = vector.multi_reduction <add>, %81, %cst_59 [1] : vector<8x32xf32> to vector<8xf32>
    %87 = vector.shape_cast %86 : vector<8xf32> to vector<8x1xf32>
    %cst_60 = arith.constant 3.200000e+01 : f32
    %88 = vector.broadcast %cst_60 : f32 to vector<8x1xf32>
    %89 = arith.divf %87, %88 : vector<8x1xf32>
    %90 = vector.broadcast %89 : vector<8x1xf32> to vector<8x32xf32>
    %91 = arith.subf %81, %90 : vector<8x32xf32>
    %92 = arith.mulf %91, %91 : vector<8x32xf32>
    %cst_61 = arith.constant dense<0.000000e+00> : vector<8xf32>
    %93 = vector.multi_reduction <add>, %92, %cst_61 [1] : vector<8x32xf32> to vector<8xf32>
    %94 = vector.shape_cast %93 : vector<8xf32> to vector<8x1xf32>
    %cst_62 = arith.constant 3.200000e+01 : f32
    %95 = vector.broadcast %cst_62 : f32 to vector<8x1xf32>
    %96 = arith.divf %94, %95 : vector<8x1xf32>
    %97 = vector.broadcast %89 : vector<8x1xf32> to vector<8x32xf32>
    %98 = arith.subf %81, %97 : vector<8x32xf32>
    %cst_63 = arith.constant 9.99999974E-6 : f32
    %99 = vector.broadcast %cst_63 : f32 to vector<8x1xf32>
    %100 = arith.addf %96, %99 : vector<8x1xf32>
    %101 = math.rsqrt %100 : vector<8x1xf32>
    %102 = vector.broadcast %101 : vector<8x1xf32> to vector<8x32xf32>
    %103 = arith.mulf %98, %102 : vector<8x32xf32>
    %104 = vector.broadcast %83 : vector<1x32xf32> to vector<8x32xf32>
    %105 = arith.mulf %103, %104 : vector<8x32xf32>
    %106 = vector.broadcast %85 : vector<1x32xf32> to vector<8x32xf32>
    %107 = arith.addf %105, %106 : vector<8x32xf32>
    %108 = arith.truncf %107 : vector<8x32xf32> to vector<8x32xbf16>
    %c0_64 = arith.constant 0 : index
    %c0_65 = arith.constant 0 : index
    %c0_66 = arith.constant 0 : index
    %109 = vector.load %arg15[%c0_64, %c0_65, %c0_66] : memref<1x32x128xbf16, #tpu.memory_space<vmem>>, vector<1x32x128xbf16>
    %110 = vector.shape_cast %109 : vector<1x32x128xbf16> to vector<32x128xbf16>
    %cst_67 = arith.constant dense<0.000000e+00> : vector<8x128xf32>
    %111 = tpu.matmul %108, %110, %cst_67 {dimension_numbers = #tpu.dot_dimension_numbers<[1], [0], [0], [1], [0, 0, 1, 1], [], []>} : vector<8x32xbf16>, vector<32x128xbf16>, vector<8x128xf32> -> vector<8x128xf32>
    %c0_68 = arith.constant 0 : index
    %c0_69 = arith.constant 0 : index
    %c0_70 = arith.constant 0 : index
    %112 = vector.load %arg16[%c0_68, %c0_69, %c0_70] : memref<1x1x128xf32, #tpu.memory_space<vmem>>, vector<1x1x128xf32>
    %113 = vector.shape_cast %112 : vector<1x1x128xf32> to vector<1x128xf32>
    %114 = vector.broadcast %113 : vector<1x128xf32> to vector<8x128xf32>
    %115 = arith.addf %111, %114 : vector<8x128xf32>
    %cst_71 = arith.constant 5.000000e-01 : f32
    %116 = vector.broadcast %cst_71 : f32 to vector<8x128xf32>
    %117 = arith.mulf %116, %115 : vector<8x128xf32>
    %cst_72 = arith.constant 4.471500e-02 : f32
    %118 = vector.broadcast %cst_72 : f32 to vector<8x128xf32>
    %119 = arith.mulf %118, %115 : vector<8x128xf32>
    %120 = arith.mulf %119, %115 : vector<8x128xf32>
    %121 = arith.mulf %120, %115 : vector<8x128xf32>
    %122 = arith.addf %115, %121 : vector<8x128xf32>
    %cst_73 = arith.constant 0.797884583 : f32
    %123 = vector.broadcast %cst_73 : f32 to vector<8x128xf32>
    %124 = arith.mulf %123, %122 : vector<8x128xf32>
    %125 = math.tanh %124 : vector<8x128xf32>
    %cst_74 = arith.constant 1.000000e+00 : f32
    %126 = vector.broadcast %cst_74 : f32 to vector<8x128xf32>
    %127 = arith.addf %126, %125 : vector<8x128xf32>
    %128 = arith.mulf %117, %127 : vector<8x128xf32>
    %129 = arith.truncf %128 : vector<8x128xf32> to vector<8x128xbf16>
    %c0_75 = arith.constant 0 : index
    %c0_76 = arith.constant 0 : index
    %c0_77 = arith.constant 0 : index
    %130 = vector.load %arg17[%c0_75, %c0_76, %c0_77] : memref<1x128x32xbf16, #tpu.memory_space<vmem>>, vector<1x128x32xbf16>
    %131 = vector.shape_cast %130 : vector<1x128x32xbf16> to vector<128x32xbf16>
    %cst_78 = arith.constant dense<0.000000e+00> : vector<8x32xf32>
    %132 = tpu.matmul %129, %131, %cst_78 {dimension_numbers = #tpu.dot_dimension_numbers<[1], [0], [0], [1], [0, 0, 1, 1], [], []>} : vector<8x128xbf16>, vector<128x32xbf16>, vector<8x32xf32> -> vector<8x32xf32>
    %c0_79 = arith.constant 0 : index
    %c0_80 = arith.constant 0 : index
    %c0_81 = arith.constant 0 : index
    %133 = vector.load %arg18[%c0_79, %c0_80, %c0_81] : memref<1x1x32xf32, #tpu.memory_space<vmem>>, vector<1x1x32xf32>
    %134 = vector.shape_cast %133 : vector<1x1x32xf32> to vector<1x32xf32>
    %135 = vector.broadcast %134 : vector<1x32xf32> to vector<8x32xf32>
    %136 = arith.addf %132, %135 : vector<8x32xf32>
    %137 = arith.addf %81, %136 : vector<8x32xf32>
    %c0_82 = arith.constant 0 : index
    %c0_83 = arith.constant 0 : index
    %138 = vector.load %arg20[%c0_82, %c0_83] : memref<8x32xf32, #tpu.memory_space<vmem>>, vector<8x32xf32>
    tpu.vector_store %arg20[%c0_82, %c0_83], %137 {strides = array<i32>} : memref<8x32xf32, #tpu.memory_space<vmem>>, vector<8x32xf32>,
    %c1_i32 = arith.constant 1 : i32
    %139 = arith.cmpi eq, %arg1, %c1_i32 : i32
    %140 = arith.extui %139 : i1 to i32
    %c0_i32_84 = arith.constant 0 : i32
    %141 = arith.cmpi ne, %140, %c0_i32_84 : i32
    scf.if %141 {
      %c0_85 = arith.constant 0 : index
      %c0_86 = arith.constant 0 : index
      %c0_87 = arith.constant 0 : index
      %142 = vector.load %arg19[%c0_85, %c0_86, %c0_87] : memref<1x8x32xf32, #tpu.memory_space<vmem>>, vector<1x8x32xf32>
      %143 = vector.shape_cast %142 : vector<1x8x32xf32> to vector<8x32xf32>
      %144 = vector.shape_cast %137 : vector<8x32xf32> to vector<1x8x32xf32>
      tpu.vector_store %arg19[%c0_85, %c0_86, %c0_87], %144 {strides = array<i32>} : memref<1x8x32xf32, #tpu.memory_space<vmem>>, vector<1x8x32xf32>,
    } else {
    }
    return
  }
  func.func @transform_0(%arg0: i32, %arg1: i32) -> (i32, i32, i32) {
    %c0_i32 = arith.constant 0 : i32
    %c0_i32_0 = arith.constant 0 : i32
    %c0_i32_1 = arith.constant 0 : i32
    return %arg0, %c0_i32, %c0_i32_0 : i32, i32, i32
  }
  func.func @transform_1(%arg0: i32, %arg1: i32) -> (i32, i32, i32) {
    %c0_i32 = arith.constant 0 : i32
    %c0_i32_0 = arith.constant 0 : i32
    %c0_i32_1 = arith.constant 0 : i32
    return %arg1, %c0_i32, %c0_i32_0 : i32, i32, i32
  }
  func.func @transform_2(%arg0: i32, %arg1: i32) -> (i32, i32, i32) {
    %c0_i32 = arith.constant 0 : i32
    %c0_i32_0 = arith.constant 0 : i32
    %c0_i32_1 = arith.constant 0 : i32
    return %arg1, %c0_i32, %c0_i32_0 : i32, i32, i32
  }
  func.func @transform_3(%arg0: i32, %arg1: i32) -> (i32, i32, i32, i32) {
    %c0_i32 = arith.constant 0 : i32
    %c0_i32_0 = arith.constant 0 : i32
    %c0_i32_1 = arith.constant 0 : i32
    %c0_i32_2 = arith.constant 0 : i32
    return %arg1, %c0_i32, %c0_i32_0, %c0_i32_1 : i32, i32, i32, i32
  }
  func.func @transform_4(%arg0: i32, %arg1: i32) -> (i32, i32, i32, i32) {
    %c0_i32 = arith.constant 0 : i32
    %c0_i32_0 = arith.constant 0 : i32
    %c0_i32_1 = arith.constant 0 : i32
    %c0_i32_2 = arith.constant 0 : i32
    return %arg1, %c0_i32, %c0_i32_0, %c0_i32_1 : i32, i32, i32, i32
  }
  func.func @transform_5(%arg0: i32, %arg1: i32) -> (i32, i32, i32, i32) {
    %c0_i32 = arith.constant 0 : i32
    %c0_i32_0 = arith.constant 0 : i32
    %c0_i32_1 = arith.constant 0 : i32
    %c0_i32_2 = arith.constant 0 : i32
    return %arg1, %c0_i32, %c0_i32_0, %c0_i32_1 : i32, i32, i32, i32
  }
  func.func @transform_6(%arg0: i32, %arg1: i32) -> (i32, i32, i32, i32) {
    %c0_i32 = arith.constant 0 : i32
    %c0_i32_0 = arith.constant 0 : i32
    %c0_i32_1 = arith.constant 0 : i32
    %c0_i32_2 = arith.constant 0 : i32
    return %arg1, %c0_i32, %c0_i32_0, %c0_i32_1 : i32, i32, i32, i32
  }
  func.func @transform_7(%arg0: i32, %arg1: i32) -> (i32, i32, i32, i32) {
    %c0_i32 = arith.constant 0 : i32
    %c0_i32_0 = arith.constant 0 : i32
    %c0_i32_1 = arith.constant 0 : i32
    %c0_i32_2 = arith.constant 0 : i32
    return %arg1, %c0_i32, %c0_i32_0, %c0_i32_1 : i32, i32, i32, i32
  }
  func.func @transform_8(%arg0: i32, %arg1: i32) -> (i32, i32, i32, i32) {
    %c0_i32 = arith.constant 0 : i32
    %c0_i32_0 = arith.constant 0 : i32
    %c0_i32_1 = arith.constant 0 : i32
    %c0_i32_2 = arith.constant 0 : i32
    return %arg1, %c0_i32, %c0_i32_0, %c0_i32_1 : i32, i32, i32, i32
  }
  func.func @transform_9(%arg0: i32, %arg1: i32) -> (i32, i32, i32, i32) {
    %c0_i32 = arith.constant 0 : i32
    %c0_i32_0 = arith.constant 0 : i32
    %c0_i32_1 = arith.constant 0 : i32
    %c0_i32_2 = arith.constant 0 : i32
    return %arg1, %c0_i32, %c0_i32_0, %c0_i32_1 : i32, i32, i32, i32
  }
  func.func @transform_10(%arg0: i32, %arg1: i32) -> (i32, i32, i32) {
    %c0_i32 = arith.constant 0 : i32
    %c0_i32_0 = arith.constant 0 : i32
    %c0_i32_1 = arith.constant 0 : i32
    return %arg1, %c0_i32, %c0_i32_0 : i32, i32, i32
  }
  func.func @transform_11(%arg0: i32, %arg1: i32) -> (i32, i32, i32) {
    %c0_i32 = arith.constant 0 : i32
    %c0_i32_0 = arith.constant 0 : i32
    %c0_i32_1 = arith.constant 0 : i32
    return %arg1, %c0_i32, %c0_i32_0 : i32, i32, i32
  }
  func.func @transform_12(%arg0: i32, %arg1: i32) -> (i32, i32, i32) {
    %c0_i32 = arith.constant 0 : i32
    %c0_i32_0 = arith.constant 0 : i32
    %c0_i32_1 = arith.constant 0 : i32
    return %arg1, %c0_i32, %c0_i32_0 : i32, i32, i32
  }
  func.func @transform_13(%arg0: i32, %arg1: i32) -> (i32, i32, i32) {
    %c0_i32 = arith.constant 0 : i32
    %c0_i32_0 = arith.constant 0 : i32
    %c0_i32_1 = arith.constant 0 : i32
    return %arg1, %c0_i32, %c0_i32_0 : i32, i32, i32
  }
  func.func @transform_14(%arg0: i32, %arg1: i32) -> (i32, i32, i32) {
    %c0_i32 = arith.constant 0 : i32
    %c0_i32_0 = arith.constant 0 : i32
    %c0_i32_1 = arith.constant 0 : i32
    return %arg1, %c0_i32, %c0_i32_0 : i32, i32, i32
  }
  func.func @transform_15(%arg0: i32, %arg1: i32) -> (i32, i32, i32) {
    %c0_i32 = arith.constant 0 : i32
    %c0_i32_0 = arith.constant 0 : i32
    %c0_i32_1 = arith.constant 0 : i32
    return %arg1, %c0_i32, %c0_i32_0 : i32, i32, i32
  }
  func.func @transform_16(%arg0: i32, %arg1: i32) -> (i32, i32, i32) {
    %c0_i32 = arith.constant 0 : i32
    %c0_i32_0 = arith.constant 0 : i32
    %c0_i32_1 = arith.constant 0 : i32
    return %arg1, %c0_i32, %c0_i32_0 : i32, i32, i32
  }
  func.func @transform_17(%arg0: i32, %arg1: i32) -> (i32, i32, i32) {
    %c0_i32 = arith.constant 0 : i32
    %c0_i32_0 = arith.constant 0 : i32
    %c0_i32_1 = arith.constant 0 : i32
    return %arg0, %c0_i32, %c0_i32_0 : i32, i32, i32
  }
}

</mosaic_0001>

<bundles_post_ra>
// kernel: tpu_custom_call.1
= control target key start
LH: loop header
LB: loop body
LE: loop exit
PB: predicated region body
PF: predicated region fallthrough
CT: control target
= control target key end

     0   :  { %s3934_s0 = inlined_call_operand.vmem [shape: f32[2,8,32], index: 0, kind: input, shape index: {}]   ;;  %s3935_s1 = inlined_call_operand.vmem [shape: f32[2,1,32], index: 1, kind: input, shape index: {}]   ;;  %s3936_s2 = inlined_call_operand.vmem [shape: f32[2,1,32], index: 2, kind: input, shape index: {}]   ;;  %s3937_s3 = inlined_call_operand.vmem [shape: bf16[2,4,32,8], index: 3, kind: input, shape index: {}]   ;;  %s3938_s4 = inlined_call_operand.vmem [shape: f32[2,4,1,8], index: 4, kind: input, shape index: {}]   ;;  %s3939_s5 = inlined_call_operand.vmem [shape: bf16[2,4,32,8], index: 5, kind: input, shape index: {}]   ;;  %s3940_s6 = inlined_call_operand.vmem [shape: f32[2,4,1,8], index: 6, kind: input, shape index: {}]   ;;  %s3941_s7 = inlined_call_operand.vmem [shape: bf16[2,4,32,8], index: 7, kind: input, shape index: {}]   ;;  %s3942_s8 = inlined_call_operand.vmem [shape: f32[2,4,1,8], index: 8, kind: input, shape index: {}]   ;;  %s3943_s9 = inlined_call_operand.vmem [shape: bf16[2,4,8,32], index: 9, kind: input, shape index: {}]   ;;  %s3944_s10 = inlined_call_operand.vmem [shape: f32[2,1,32], index: 10, kind: input, shape index: {}]   ;;  %s3945_s11 = inlined_call_operand.vmem [shape: f32[2,1,32], index: 11, kind: input, shape index: {}]   ;;  %s3946_s12 = inlined_call_operand.vmem [shape: f32[2,1,32], index: 12, kind: input, shape index: {}]   ;;  %s3947_s13 = inlined_call_operand.vmem [shape: bf16[2,32,128], index: 13, kind: input, shape index: {}]   ;;  %s3948_s14 = inlined_call_operand.vmem [shape: f32[2,1,128], index: 14, kind: input, shape index: {}]   ;;  %s3949_s15 = inlined_call_operand.vmem [shape: bf16[2,128,32], index: 15, kind: input, shape index: {}]   ;;  %s3950_s16 = inlined_call_operand.vmem [shape: f32[2,1,32], index: 16, kind: input, shape index: {}]   ;;  %s3951_s17 = inlined_call_operand.hbm [shape: f32[2,8,32], index: 17, kind: output, shape index: {}]  }
   0x1   :  { %3969 = sst [smem:[#allocation21_spill]] %s3934_s0 }
   0x2   :  { %3970 = sst [smem:[#allocation22_spill]] %s3935_s1 }
   0x3   :  { %3971 = sst [smem:[#allocation23_spill]] %s3936_s2 }
   0x4   :  { %3972 = sst [smem:[#allocation24_spill]] %s3937_s3 }
   0x5   :  { %3973 = sst [smem:[#allocation25_spill]] %s3938_s4 }
   0x6   :  { %3974 = sst [smem:[#allocation26_spill]] %s3939_s5 }
   0x7   :  { %3975 = sst [smem:[#allocation27_spill]] %s3940_s6 }
   0x8   :  { %3976 = sst [smem:[#allocation28_spill]] %s3941_s7 }
   0x9   :  { %3977 = sst [smem:[#allocation29_spill]] %s3942_s8 }
   0xa   :  { %3978 = sst [smem:[#allocation30_spill]] %s3943_s9 }
   0xb   :  { %3979 = sst [smem:[#allocation31_spill]] %s3945_s11 }
   0xc   :  { %3980 = sst [smem:[#allocation32_spill]] %s3949_s15 }
   0xd   :  { %3981 = sst [smem:[#allocation33_spill]] %s3950_s16 }
   0xe   :  { %3982 = sst [smem:[#allocation34_spill]] %s3951_s17 }
   0xf   :  { %22 = vsyncpa [#allocation4], 0 }
  0x10   :  { %24 = vsyncpa [#allocation4 + $0x1], 0  ;;  %s3444_s24 = smov 0   ;;  %s3446_s25 = smov 0  }
  0x11   :  { %s3448_s26 = smov 0   ;;  %s3450_s27 = smov 0  }
  0x12   :  { %s3452_s28 = smov 0   ;;  %s3454_s29 = smov 0  }
  0x13   :  { %s3456_s0 = smov 0   ;;  %s3458_s30 = smov 0  }
  0x14 LB: > { %3983 = sst [smem:[#allocation6_spill]] %s3321_s24  ;;  %s2746_s18 = sadd.s32 4294967295, %s3349_s30   ;;  %s3349_s30 = sphi %s3458_s30, %s30_s30   ;;  %s3345_s0 = sphi %s3456_s0, %s4039_s0   ;;  %s3341_s29 = sphi %s3454_s29, %s4038_s29   ;;  %s3337_s28 = sphi %s3452_s28, %s4037_s28   ;;  %s3333_s27 = sphi %s3450_s27, %s4036_s27   ;;  %s3329_s26 = sphi %s3448_s26, %s4035_s26   ;;  %s3325_s25 = sphi %s3446_s25, %s4034_s25   ;;  %s3321_s24 = sphi %s3444_s24, %s4033_s24  }
  0x15   : > { %3984 = sst [smem:[#allocation7_spill]] %s3325_s25  ;;  %s2747_s19 = sadd.s32 4294967294, %s3349_s30  }
  0x16   : > { %3985 = sst [smem:[#allocation8_spill]] %s3329_s26  ;;  %s39_s1 = sadd.s32 1, %s3341_s29 }
  0x17   : > { %3986 = sst [smem:[#allocation9_spill]] %s3333_s27  ;;  %p40_p0 = scmp.ge.s32.totalorder %s39_s1, 2 }
  0x18   : > { %3987 = sst [smem:[#allocation10_spill]] %s3337_s28  ;;  %s42_s20 = sadd.s32 1, %s3345_s0 }
  0x19   : > { %3988 = sst [smem:[#allocation11_spill]] %s3341_s29  ;;  %p501_p1 = scmp.ne.s32.totalorder %s3329_s26, %s3325_s25 }
  0x1a   : > { %3989 = sst [smem:[#allocation12_spill]] %s3345_s0  ;;  %p502_p2 = scmp.eq.s32.totalorder %s2746_s18, 3 }
  0x1b   : > { %3990 = sst [smem:[#allocation13_spill]] %s3349_s30  ;;  %s4041_s1 = smov (%p40_p0, %s39_s1), 0 }
  0x1c   : > { %3991 = sst [smem:[#allocation14_spill]] %s4041_s1  ;;  %s4043_s20 = smov (!%p40_p0, %s42_s20), %s3345_s0 }
  0x1d   : > { %p3493_p3 = por %p502_p2, %p501_p1  ;;  %p507_p4 = scmp.ne.s32.totalorder %s3325_s25, %s3321_s24 }
  0x1e   : > { %p44_p5 = scmp.ge.s32.totalorder %s4043_s20, 2  ;;  %p508_p6 = scmp.eq.s32.totalorder %s2747_s19, 3 }
  0x1f   : > { %s3992_s21 = scalar_select %p3493_p3, 1, 0 }
  0x20   : > { %p2750_p7 = scmp.ge.s32.totalorder %s3349_s30, 1  ;;  %p644_p8 = scmp.lt.s32.totalorder %s3349_s30, 5 }
  0x21   : > { %3993 = sst [smem:[#allocation15_spill]] %s3992_s21  ;;  %s4045_s20 = smov (%p44_p5, %s4043_s20), 0 }
  0x22   : > { %3994 = sst [smem:[#allocation16_spill]] %s4045_s20  ;;  %p3503_p9 = por %p508_p6, %p507_p4 }
  0x23   : > { %p645_p10 = pnand %p2750_p7, %p644_p8  ;;  %s488_s23 = ssub.s32 %s3345_s0, %s4045_s20 }
  0x24   : > { %s3995_s22 = scalar_select %p3503_p9, 1, 0 }
  0x25   : > { %s491_s18 = sadd.s32 1, %s3329_s26  ;;  %p489_p11 = scmp.eq.s32.totalorder %s488_s23, 0 }
  0x26   : > { %3996 = sst [smem:[#allocation17_spill]] %s3995_s22  ;;  %648 = sbr.rel (%p645_p10) target bundleno = 2416 (0x970), region = 88 }
  0x27   : > { %s3511_s1 = scalar_select %p489_p11, %s3329_s26, %s491_s18  }
  0x29   : > { %3997 = sst [smem:[#allocation18_spill]] %s3511_s1 }
  0x2d   : > { %s3958_s19 = sand.u32 1, %s3325_s25   ;;  %p758_p12 = scmp.lt.s32.totalorder %s3337_s28, 1 }
  0x2e   : > { %s3517_s29 = sshll.u32 %s3958_s19, 3  ;;  %p762_p13 = scmp.lt.s32.totalorder %s3333_s27, 1 }
  0x2f   : > { %s759_s22 = scalar_select %p758_p12, %s3337_s28, 1 }
  0x30   : > { %s3522_s24 = scalar_select %p762_p13, %s3333_s27, 1 }
  0x31   : > { %s2752_s23 = sshll.u32 %s759_s22, 3  ;;  %s3998_s0 = sld [smem:[#allocation21_spill]] }
  0x32   : > { %s2852_s27 = sshll.u32 %s3522_s24, 6  ;;  %s4001_s3 = sld [smem:[#allocation24_spill]] }
  0x33   : > { %s2755_s20 = sshll.u32 %s3522_s24, 2  ;;  %s4002_s4 = sld [smem:[#allocation25_spill]] }
  0x34   : > { %s4004_s5 = sld [smem:[#allocation26_spill]]  ;;  %s4005_s6 = sld [smem:[#allocation27_spill]] }
  0x35   : > { %s4006_s7 = sld [smem:[#allocation28_spill]]  ;;  %s4007_s8 = sld [smem:[#allocation29_spill]] }
  0x36   : > { %s4008_s9 = sld [smem:[#allocation30_spill]]  ;;  %s808_s2 = scalar_lea.vmem %s3946_s12, %s3522_s24 }
  0x37   : > { %s761_s1 = scalar_lea.vmem %s3998_s0, %s2752_s23  ;;  %s2855_s0 = sshll.u32 %s3522_s24, 4 }
  0x38   : > { %s3539_s22 = scalar_lea.vmem %s4001_s3, %s2852_s27  ;;  %s4011_s21 = sld [smem:[#allocation32_spill]] }
  0x39   : > { %s3545_s23 = scalar_lea.vmem %s4002_s4, %s2755_s20  ;;  %s4012_s15 = sld [smem:[#allocation33_spill]] }
  0x3a   : > { %4003 = sst [smem:[#allocation19_spill]] %s3545_s23  ;;  %s3550_s25 = scalar_lea.vmem %s4004_s5, %s2852_s27 }
  0x3b   : > { %s3555_s28 = scalar_lea.vmem %s4005_s6, %s2755_s20  ;;  %s3560_s17 = scalar_lea.vmem %s4006_s7, %s2852_s27 }
  0x3c   : > { %s3565_s18 = scalar_lea.vmem %s4007_s8, %s2755_s20  ;;  %s3571_s30 = scalar_lea.vmem %s4008_s9, %s2855_s0 }
  0x3d   : > { %4009 = sst [smem:[#allocation20_spill]] %s3571_s30  ;;  %s3588_s8 = scalar_lea.vmem %s3947_s13, %s2855_s0 }
  0x3e   : > { %s816_s9 = scalar_lea.vmem %s3948_s14, %s3522_s24  ;;  %s3597_s19 = scalar_lea.vmem %s4011_s21, %s2852_s27 }
  0x3f   : > { %s824_s11 = scalar_lea.vmem %s4012_s15, %s3522_s24  ;;  %s757_s7 = scalar_lea.vmem [#allocation3], %s3517_s29 }
  0x40   : > { %s4013_s16 = sld [smem:[#allocation9_spill]] }
  0x46   : > { %p2768_p0 = scmp.ne.s32.totalorder %s4013_s16, 0 }
  0x47   : > { %v830_v0 = vld [vmem:[%s761_s1] sm:$0xff] (!%p2768_p0)  ;;  %vm831_vm0 = vcmask (!%p2768_p0), 261120  }
  0x48   : > { %829 = sbr.rel (%p2768_p0) target bundleno = 79 (0x4f), region = 92  ;;  %832 = vst.msk [vmem:[#allocation2] sm:$0xff] (!%p2768_p0), %vm831_vm0, %v830_v0 }
  0x4f PF: > { %v3605_v1 = vld [vmem:[#allocation2] sm:$0xff]  ;;  %vm836_vm1 = vcmask 261120   ;;  %v3200_v9 = vld [vmem:[%s3539_s22 + $0x30] sm:$0xff]   ;;  %v3351_v10 = vmov 0.0   ;;  %v3201_v11 = vld [vmem:[%s3539_s22 + $0x8] sm:$0xff]   ;;  %vm3352_vm2 = vmmov 0  }
  0x50   : > { %v837_v2 = vsel %vm836_vm1, %v3605_v1, 0.0  ;;  %v3199_v8 = vld [vmem:[%s3539_s22] sm:$0xff]   ;;  %2930 = vmatprep.subr.bf16.mxu0 %v3351_v10  ;;  %2954 = vmatprep.subr.bf16.mxu1 %v3351_v10  ;;  %v3202_v12 = vld [vmem:[%s3539_s22 + $0x38] sm:$0xff]   ;;  %s4014_s0 = sld [smem:[#allocation22_spill]]  ;;  %s4016_s20 = sld [smem:[#allocation23_spill]]  ;;  %v3203_v22 = vld [vmem:[%s3539_s22 + $0x10] sm:$0xff]  }
  0x51   : > { %838 = vadd.xlane.f32.xlu0 %v837_v2  ;;  %2931 = vmatpush3.bf16.msra.mxu0 %v3199_v8  ;;  %v3204_v23 = vld [vmem:[%s3550_s25 + $0x10] sm:$0xff]   ;;  %v3205_v25 = vld [vmem:[%s3539_s22 + $0x18] sm:$0xff]   ;;  %v3207_v27 = vld [vmem:[%s3539_s22 + $0x20] sm:$0xff]   ;;  %vm1633_vm3 = vcmask 64512   ;;  %vm1877_vm4 = vcmask 1043456   ;;  %s4021_s21 = sld [smem:[#allocation31_spill]] }
  0x52   : > { %2955 = vmatpush3.bf16.msra.mxu1 %v3200_v9  ;;  %2932 = vmatprep.subr.bf16.mxu0 %v3351_v10  ;;  %v3206_v26 = vld [vmem:[%s3550_s25 + $0x18] sm:$0xff]   ;;  %v3208_v28 = vld [vmem:[%s3550_s25 + $0x30] sm:$0xff]   ;;  %v3209_v29 = vld [vmem:[%s3539_s22 + $0x28] sm:$0xff]   ;;  %s4024_s1 = sld [smem:[#allocation9_spill]] }
  0x53   : > { %2956 = vmatprep.subr.bf16.mxu1 %v3351_v10  ;;  %2934 = vmatprep.mubr.msk.bf16.mxu0 %vm3352_vm2, %v3351_v10  ;;  %v3210_v30 = vld [vmem:[%s3550_s25 + $0x38] sm:$0xff]   ;;  %v3211_v31 = vld [vmem:[%s3550_s25] sm:$0xff]   ;;  %v3212_v32 = vld [vmem:[%s3560_s17 + $0x10] sm:$0xff]  }
  0x54   : > { %2958 = vmatprep.mubr.msk.bf16.mxu1 %vm3352_vm2, %v3351_v10  ;;  %v3213_v33 = vld [vmem:[%s3550_s25 + $0x8] sm:$0xff]   ;;  %v3214_v34 = vld [vmem:[%s3560_s17 + $0x18] sm:$0xff]   ;;  %v3215_v35 = vld [vmem:[%s3550_s25 + $0x20] sm:$0xff]  }
  0x55   : > { %2933 = vmatpush3.bf16.msra.mxu0 %v3201_v11  ;;  %v3216_v36 = vld [vmem:[%s3560_s17 + $0x30] sm:$0xff]   ;;  %v3217_v37 = vld [vmem:[%s3550_s25 + $0x28] sm:$0xff]   ;;  %v3218_v38 = vld [vmem:[%s3560_s17 + $0x38] sm:$0xff]  }
  0x56   : > { %2957 = vmatpush3.bf16.msra.mxu1 %v3202_v12  ;;  %2938 = vmatprep.subr.bf16.mxu0 %v3351_v10  ;;  %s4015_s30 = scalar_lea.vmem %s4014_s0, %s3522_s24  ;;  %s4017_s4 = scalar_lea.vmem %s4016_s20, %s3522_s24  ;;  %v3219_v39 = vld [vmem:[%s3560_s17] sm:$0xff]   ;;  %v3220_v40 = vld [vmem:[%s3560_s17 + $0x8] sm:$0xff]  }
  0x57   : > { %2970 = vmatprep.subr.bf16.mxu1 %v3351_v10  ;;  %v2769_v17 = vld [vmem:[%s4015_s30] ss:$0 sm:$0xff]  ;;  %v3222_v42 = vld [vmem:[%s3560_s17 + $0x28] sm:$0xff]   ;;  %v2788_v51 = vld [vmem:[%s3555_s28 + $0x1] ss:$0 sm:$0xff]  ;;  %s4022_s6 = scalar_lea.vmem %s4021_s21, %s3522_s24 }
  0x58   : > { %v2770_v19 = vld [vmem:[%s4017_s4] ss:$0 sm:$0xff]  ;;  %v2790_v0 = vld [vmem:[%s3555_s28 + $0x3] ss:$0 sm:$0xff]  ;;  %p2847_p1 = scmp.ne.s32.totalorder %s4024_s1, 1 }
  0x59   : > { %v3221_v41 = vld [vmem:[%s3560_s17 + $0x20] sm:$0xff]   ;;  %s4018_s17 = sld [smem:[#allocation19_spill]] }
  0x5f   : > { %v2772_v62 = vld [vmem:[%s4018_s17 + $0x1] ss:$0 sm:$0xff] }
  0xde   : > { %v839_v3 = vpop.xlane.xlu0 %838 }
  0xdf   : > { %v841_v4 = vmul.f32 0.03125, %v839_v3 }
  0xe1   : > { %v842_v5 = vsub.f32 %v3605_v1, %v841_v4 }
  0xe3   : > { %v843_v6 = vmul.f32 %v842_v5, %v842_v5 }
  0xe5   : > { %v844_v7 = vsel %vm836_vm1, %v843_v6, 0.0 }
  0xe6   : > { %845 = vadd.xlane.f32.xlu0 %v844_v7 }
 0x173   : > { %v846_v13 = vpop.xlane.xlu0 %845 }
 0x174   : > { %v847_v14 = vmul.f32 0.03125, %v846_v13 }
 0x176   : > { %v848_v15 = vadd.f32 1e-05, %v847_v14 }
 0x178   : > { %3233 = vrsqrt.f32 %v848_v15  ;;  %v2774_v15 = vld [vmem:[%s4018_s17 + $0x3] ss:$0 sm:$0xff] }
 0x182   : > { %v3234_v16 = vpop.eup %3233 }
 0x183   : > { %v850_v18 = vmul.f32 %v3234_v16, %v842_v5 }
 0x185   : > { %v857_v20 = vmul.f32 %v2769_v17, %v850_v18  ;;  %v2787_v17 = vld [vmem:[%s3555_s28] ss:$0 sm:$0xff]  ;;  %v2804_v18 = vld [vmem:[%s3565_s18 + $0x1] ss:$0 sm:$0xff] }
 0x187   : > { %v864_v21 = vadd.f32 %v2770_v19, %v857_v20 }
 0x189   : > { %v3637_v24 = vpack.c.bf16 %v864_v21, %v864_v21 }
 0x18b   : > { %2935 = vmatmul.mubr.msk.bf16.vlgmr.msra.gmra.mrb[0].mxu0 %vm836_vm1, %v3637_v24  ;;  %2959 = vmatmul.mubr.msk.bf16.vlgmr.msra.gmra.mrb[0].mxu1 %vm836_vm1, %v3637_v24 }
 0x18c   : > { %2939 = vmatpush3.bf16.msra.mxu0 %v3203_v22  ;;  %2971 = vmatpush3.bf16.msra.mxu1 %v3204_v23 }
 0x18d   : > { %2940 = vmatprep.subr.bf16.mxu0 %v3351_v10  ;;  %2972 = vmatprep.subr.bf16.mxu1 %v3351_v10 }
 0x18e   : > { %2942 = vmatprep.mubr.msk.bf16.mxu0 %vm3352_vm2, %v3351_v10  ;;  %2974 = vmatprep.mubr.msk.bf16.mxu1 %vm3352_vm2, %v3351_v10 }
 0x190   : > { %2941 = vmatpush3.bf16.msra.mxu0 %v3205_v25  ;;  %2973 = vmatpush3.bf16.msra.mxu1 %v3206_v26 }
 0x191   : > { %2946 = vmatprep.subr.bf16.mxu0 %v3351_v10  ;;  %2986 = vmatprep.subr.bf16.mxu1 %v3351_v10 }
 0x193   : > { %2943 = vmatmul.mubr.msk.bf16.vlgmr.msra.gmra.mrb[4].mxu0 %vm836_vm1, %v3637_v24  ;;  %2975 = vmatmul.mubr.msk.bf16.vlgmr.msra.gmra.mrb[4].mxu1 %vm836_vm1, %v3637_v24 }
 0x194   : > { %2947 = vmatpush3.bf16.msra.mxu0 %v3207_v27  ;;  %2987 = vmatpush3.bf16.msra.mxu1 %v3208_v28 }
 0x195   : > { %2948 = vmatprep.subr.bf16.mxu0 %v3351_v10  ;;  %2988 = vmatprep.subr.bf16.mxu1 %v3351_v10 }
 0x196   : > { %2950 = vmatprep.mubr.msk.bf16.mxu0 %vm3352_vm2, %v3351_v10  ;;  %2990 = vmatprep.mubr.msk.bf16.mxu1 %vm3352_vm2, %v3351_v10 }
 0x198   : > { %2949 = vmatpush3.bf16.msra.mxu0 %v3209_v29  ;;  %2989 = vmatpush3.bf16.msra.mxu1 %v3210_v30 }
 0x199   : > { %2962 = vmatprep.subr.bf16.mxu0 %v3351_v10  ;;  %3002 = vmatprep.subr.bf16.mxu1 %v3351_v10 }
 0x19b   : > { %2951 = vmatmul.mubr.msk.bf16.vlgmr.msra.gmra.mrb[8].mxu0 %vm836_vm1, %v3637_v24  ;;  %2991 = vmatmul.mubr.msk.bf16.vlgmr.msra.gmra.mrb[8].mxu1 %vm836_vm1, %v3637_v24 }
 0x19c   : > { %2963 = vmatpush3.bf16.msra.mxu0 %v3211_v31  ;;  %3003 = vmatpush3.bf16.msra.mxu1 %v3212_v32 }
 0x19d   : > { %2964 = vmatprep.subr.bf16.mxu0 %v3351_v10  ;;  %3004 = vmatprep.subr.bf16.mxu1 %v3351_v10 }
 0x19e   : > { %2966 = vmatprep.mubr.msk.bf16.mxu0 %vm3352_vm2, %v3351_v10  ;;  %3006 = vmatprep.mubr.msk.bf16.mxu1 %vm3352_vm2, %v3351_v10 }
 0x1a0   : > { %2965 = vmatpush3.bf16.msra.mxu0 %v3213_v33  ;;  %3005 = vmatpush3.bf16.msra.mxu1 %v3214_v34  ;;  %v2771_v33 = vld [vmem:[%s4018_s17] ss:$0 sm:$0xff] }
 0x1a1   : > { %2978 = vmatprep.subr.bf16.mxu0 %v3351_v10  ;;  %3018 = vmatprep.subr.bf16.mxu1 %v3351_v10 }
 0x1a3   : > { %2967 = vmatmul.mubr.msk.bf16.vlgmr.msra.gmra.mrb[12].mxu0 %vm836_vm1, %v3637_v24  ;;  %3007 = vmatmul.mubr.msk.bf16.vlgmr.msra.gmra.mrb[12].mxu1 %vm836_vm1, %v3637_v24 }
 0x1a4   : > { %2979 = vmatpush3.bf16.msra.mxu0 %v3215_v35  ;;  %3019 = vmatpush3.bf16.msra.mxu1 %v3216_v36  ;;  %v2789_v36 = vld [vmem:[%s3555_s28 + $0x2] ss:$0 sm:$0xff]  ;;  %s4019_s28 = sld [smem:[#allocation20_spill]] }
 0x1a5   : > { %2980 = vmatprep.subr.bf16.mxu0 %v3351_v10  ;;  %3020 = vmatprep.subr.bf16.mxu1 %v3351_v10 }
 0x1a6   : > { %2982 = vmatprep.mubr.msk.bf16.mxu0 %vm3352_vm2, %v3351_v10  ;;  %3022 = vmatprep.mubr.msk.bf16.mxu1 %vm3352_vm2, %v3351_v10 }
 0x1a8   : > { %2981 = vmatpush3.bf16.msra.mxu0 %v3217_v37  ;;  %3021 = vmatpush3.bf16.msra.mxu1 %v3218_v38 }
 0x1a9   : > { %2994 = vmatprep.subr.bf16.mxu0 %v3351_v10  ;;  %3032 = vmatprep.subr.bf16.mxu1 %v3351_v10 }
 0x1ab   : > { %2983 = vmatmul.mubr.msk.bf16.vlgmr.msra.gmra.mrb[16].mxu0 %vm836_vm1, %v3637_v24  ;;  %3023 = vmatmul.mubr.msk.bf16.vlgmr.msra.gmra.mrb[16].mxu1 %vm836_vm1, %v3637_v24 }
 0x1ac   : > { %2995 = vmatpush3.bf16.msra.mxu0 %v3219_v39  ;;  %2998 = vmatprep.mubr.msk.bf16.mxu0 %vm3352_vm2, %v3351_v10 }
 0x1ad   : > { %2996 = vmatprep.subr.bf16.mxu0 %v3351_v10  ;;  %3034 = vmatprep.mubr.msk.bf16.mxu1 %vm3352_vm2, %v3351_v10 }
 0x1b0   : > { %2997 = vmatpush3.bf16.msra.mxu0 %v3220_v40 }
 0x1b1   : > { %3010 = vmatprep.subr.bf16.mxu0 %v3351_v10 }
 0x1b3   : > { %2999 = vmatmul.mubr.msk.bf16.vlgmr.msra.gmra.mrb[20].mxu0 %vm836_vm1, %v3637_v24 }
 0x1b4   : > { %3011 = vmatpush3.bf16.msra.mxu0 %v3221_v41  ;;  %3014 = vmatprep.mubr.msk.bf16.mxu0 %vm3352_vm2, %v3351_v10 }
 0x1b5   : > { %3012 = vmatprep.subr.bf16.mxu0 %v3351_v10 }
 0x1b8   : > { %3013 = vmatpush3.bf16.msra.mxu0 %v3222_v42 }
 0x1b9   : > { %3026 = vmatprep.subr.bf16.mxu0 %v3351_v10 }
 0x1bb   : > { %3015 = vmatmul.mubr.msk.bf16.vlgmr.msra.gmra.mrb[24].mxu0 %vm836_vm1, %v3637_v24 }
 0x1bc   : > { %3028 = vmatprep.mubr.msk.bf16.mxu0 %vm3352_vm2, %v3351_v10 }
 0x25e   : > { %v3725_v43 = vpop.f32.mrb[0].mxu0  ;;  %v1115_v44 = vpop.f32.mrb[0].mxu1 }
 0x25f   : > { %v2936_v45 = vpop.f32.mrb[1].mxu0  ;;  %v2960_v46 = vpop.f32.mrb[1].mxu1  ;;  %v1116_v19 = vadd.f32 %v2774_v15, %v1115_v44  ;;  %v960_v37 = vadd.f32 %v2771_v33, %v3725_v43 }
 0x260   : > { %v962_v47 = vpop.f32.mrb[2].mxu0  ;;  %v1118_v48 = vpop.f32.mrb[2].mxu1 }
 0x261   : > { %v2937_v49 = vpop.f32.mrb[3].mxu0  ;;  %v2961_v50 = vpop.f32.mrb[3].mxu1  ;;  %v1628_v28 = vpack.c.bf16 %v1116_v19, %v1116_v19  ;;  %v1625_v46 = vpack.c.bf16 %v960_v37, %v960_v37 }
 0x262   : > { %v2773_v49 = vld [vmem:[%s4018_s17 + $0x2] ss:$0 sm:$0xff] }
 0x266   : > { %v1011_v52 = vpop.f32.mrb[4].mxu0  ;;  %v1263_v53 = vpop.f32.mrb[4].mxu1 }
 0x267   : > { %v1264_v54 = vadd.f32 %v2788_v51, %v1263_v53  ;;  %v2944_v55 = vpop.f32.mrb[5].mxu0  ;;  %v2976_v56 = vpop.f32.mrb[5].mxu1  ;;  %v1012_v2 = vadd.f32 %v2772_v62, %v1011_v52  ;;  %v2803_v51 = vld [vmem:[%s3565_s18] ss:$0 sm:$0xff] }
 0x268   : > { %v1014_v57 = vpop.f32.mrb[6].mxu0  ;;  %v1266_v58 = vpop.f32.mrb[6].mxu1 }
 0x269   : > { %v1630_v59 = vpack.c.bf16 %v1264_v54, %v1264_v54  ;;  %v2945_v60 = vpop.f32.mrb[7].mxu0  ;;  %v2977_v61 = vpop.f32.mrb[7].mxu1  ;;  %v1626_v11 = vpack.c.bf16 %v1012_v2, %v1012_v2 }
 0x26b   : > { %v1684_v63 = vsel %vm1633_vm3, %v1630_v59, 0 }
 0x26c   : > { %3033 = vmatpush3.bf16.xpose.msra.mxu1 %v1684_v63 }
 0x26d   : > { %3044 = vmatprep.subr.bf16.mxu1 %v3351_v10 }
 0x26e   : > { %v1063_v3 = vpop.f32.mrb[8].mxu0  ;;  %v1367_v4 = vpop.f32.mrb[8].mxu1 }
 0x26f   : > { %v1368_v5 = vadd.f32 %v2790_v0, %v1367_v4  ;;  %v2952_v6 = vpop.f32.mrb[9].mxu0  ;;  %v2992_v7 = vpop.f32.mrb[9].mxu1  ;;  %v1064_v52 = vadd.f32 %v2773_v49, %v1063_v3 }
 0x270   : > { %v1066_v8 = vpop.f32.mrb[10].mxu0  ;;  %v1370_v9 = vpop.f32.mrb[10].mxu1 }
 0x271   : > { %v1632_v12 = vpack.c.bf16 %v1368_v5, %v1368_v5  ;;  %v2953_v13 = vpop.f32.mrb[11].mxu0  ;;  %v2993_v14 = vpop.f32.mrb[11].mxu1  ;;  %v1627_v57 = vpack.c.bf16 %v1064_v52, %v1064_v52 }
 0x273   : > { %v1776_v16 = vsel %vm1633_vm3, %v1632_v12, 0  ;;  %3035 = vmatmul.mubr.msk.bf16.vlgmr.msra.gmra.mrb[20].mxu1 %vm1633_vm3, %v1626_v11 }
 0x274   : > { %3045 = vmatpush3.bf16.xpose.msra.mxu1 %v1776_v16  ;;  %3046 = vmatprep.mubr.msk.bf16.mxu1 %vm3352_vm2, %v3351_v10 }
 0x275   : > { %3056 = vmatprep.subr.bf16.mxu1 %v3351_v10 }
 0x276   : > { %v1211_v20 = vpop.f32.mrb[12].mxu0  ;;  %v1515_v21 = vpop.f32.mrb[12].mxu1 }
 0x277   : > { %v1212_v22 = vadd.f32 %v2787_v17, %v1211_v20  ;;  %v1516_v23 = vadd.f32 %v2804_v18, %v1515_v21  ;;  %v2968_v24 = vpop.f32.mrb[13].mxu0  ;;  %v3008_v25 = vpop.f32.mrb[13].mxu1 }
 0x278   : > { %v1214_v26 = vpop.f32.mrb[14].mxu0  ;;  %v1518_v27 = vpop.f32.mrb[14].mxu1 }
 0x279   : > { %v1629_v29 = vpack.c.bf16 %v1212_v22, %v1212_v22  ;;  %v1871_v30 = vpack.c.bf16 %v1516_v23, %v1516_v23  ;;  %v2969_v31 = vpop.f32.mrb[15].mxu0  ;;  %v3009_v32 = vpop.f32.mrb[15].mxu1 }
 0x27b   : > { %v1638_v34 = vsel %vm1633_vm3, %v1629_v29, 0  ;;  %v1925_v35 = vsel %vm1877_vm4, %v1871_v30, 0  ;;  %3047 = vmatmul.mubr.msk.bf16.vlgmr.msra.gmra.mrb[24].mxu1 %vm1633_vm3, %v1628_v28 }
 0x27c   : > { %3027 = vmatpush3.bf16.xpose.msra.mxu0 %v1638_v34  ;;  %3057 = vmatpush3.bf16.msra.mxu1 %v1925_v35 }
 0x27d   : > { %3038 = vmatprep.subr.bf16.mxu0 %v3351_v10  ;;  %3058 = vmatprep.mubr.msk.bf16.mxu1 %vm3352_vm2, %v3351_v10 }
 0x27e   : > { %v1315_v38 = vpop.f32.mrb[16].mxu0  ;;  %v3749_v39 = vpop.f32.mrb[16].mxu1  ;;  %3068 = vmatprep.subr.bf16.mxu1 %v3351_v10 }
 0x27f   : > { %v1316_v40 = vadd.f32 %v2789_v36, %v1315_v38  ;;  %v2984_v41 = vpop.f32.mrb[17].mxu0  ;;  %v3024_v42 = vpop.f32.mrb[17].mxu1 }
 0x280   : > { %v1318_v44 = vpop.f32.mrb[18].mxu0  ;;  %v1622_v45 = vpop.f32.mrb[18].mxu1 }
 0x281   : > { %v1631_v47 = vpack.c.bf16 %v1316_v40, %v1316_v40  ;;  %v2985_v48 = vpop.f32.mrb[19].mxu0  ;;  %v3025_v43 = vpop.f32.mrb[19].mxu1 }
 0x283   : > { %v1730_v50 = vsel %vm1633_vm3, %v1631_v47, 0  ;;  %3029 = vmatmul.mubr.msk.bf16.vlgmr.msra.gmra.mrb[28].mxu0 %vm1633_vm3, %v1625_v46 }
 0x284   : > { %3039 = vmatpush3.bf16.xpose.msra.mxu0 %v1730_v50  ;;  %3040 = vmatprep.mubr.msk.bf16.mxu0 %vm3352_vm2, %v3351_v10  ;;  %v2805_v50 = vld [vmem:[%s3565_s18 + $0x2] ss:$0 sm:$0xff] }
 0x285   : > { %3050 = vmatprep.subr.bf16.mxu0 %v3351_v10 }
 0x286   : > { %v1463_v53 = vpop.f32.mrb[20].mxu0 }
 0x287   : > { %v1464_v54 = vadd.f32 %v2803_v51, %v1463_v53  ;;  %v3000_v55 = vpop.f32.mrb[21].mxu0  ;;  %v2806_v53 = vld [vmem:[%s3565_s18 + $0x3] ss:$0 sm:$0xff]  ;;  %s4020_s18 = scalar_lea.vmem %s3944_s10, %s3522_s24 }
 0x288   : > { %v1466_v56 = vpop.f32.mrb[22].mxu0 }
 0x289   : > { %v1870_v58 = vpack.c.bf16 %v1464_v54, %v1464_v54  ;;  %v3001_v59 = vpop.f32.mrb[23].mxu0  ;;  %v1620_v56 = vadd.f32 %v2806_v53, %v3749_v39 }
 0x28b   : > { %v1879_v60 = vsel %vm1877_vm4, %v1870_v58, 0  ;;  %3041 = vmatmul.mubr.msk.bf16.vlgmr.msra.gmra.mrb[32].mxu0 %vm1633_vm3, %v1627_v57 }
 0x28c   : > { %3051 = vmatpush3.bf16.msra.mxu0 %v1879_v60  ;;  %3052 = vmatprep.mubr.msk.bf16.mxu0 %vm3352_vm2, %v3351_v10 }
 0x28d   : > { %3062 = vmatprep.subr.bf16.mxu0 %v3351_v10 }
 0x28e   : > { %v3764_v61 = vpop.f32.mrb[24].mxu0 }
 0x28f   : > { %v3016_v62 = vpop.f32.mrb[25].mxu0  ;;  %v1568_v51 = vadd.f32 %v2805_v50, %v3764_v61 }
 0x290   : > { %v1570_v63 = vpop.f32.mrb[26].mxu0  ;;  %v1873_v62 = vpack.c.bf16 %v1620_v56, %v1620_v56 }
 0x291   : > { %v3017_v0 = vpop.f32.mrb[27].mxu0  ;;  %v1872_v57 = vpack.c.bf16 %v1568_v51, %v1568_v51 }
 0x293   : > { %v1971_v63 = vsel %vm1877_vm4, %v1872_v57, 0  ;;  %v2831_v57 = vld [vmem:[%s4020_s18] ss:$0 sm:$0xff] }
 0x346   : > { %v1720_v2 = vpop.f32.mrb[20].mxu1 }
 0x347   : > { %v3036_v3 = vpop.f32.mrb[21].mxu1  ;;  %v1819_v15 = vmul.f32 0.35355338, %v1720_v2 }
 0x348   : > { %v1723_v4 = vpop.f32.mrb[22].mxu1  ;;  %v2017_v3 = vsel %vm1877_vm4, %v1873_v62, 0 }
 0x349   : > { %v3037_v5 = vpop.f32.mrb[23].mxu1  ;;  %v1825_v19 = vsel %vm1633_vm3, %v1819_v15, -inf  ;;  %v2063_v4 = vld [vmem:[%s4019_s28] sm:$0xf] }
 0x34e   : > { %v1812_v6 = vpop.f32.mrb[24].mxu1 }
 0x34f   : > { %v3048_v7 = vpop.f32.mrb[25].mxu1  ;;  %v1821_v18 = vmul.f32 0.35355338, %v1812_v6 }
 0x350   : > { %v1815_v8 = vpop.f32.mrb[26].mxu1 }
 0x351   : > { %v3049_v9 = vpop.f32.mrb[27].mxu1  ;;  %v1831_v25 = vsel %vm1633_vm3, %v1821_v18, -inf  ;;  %v2071_v8 = vsel %vm1877_vm4, %v2063_v4, 0 }
 0x356   : > { %v1674_v11 = vpop.f32.mrb[28].mxu0 }
 0x357   : > { %v1818_v12 = vmul.f32 0.35355338, %v1674_v11  ;;  %v3030_v13 = vpop.f32.mrb[29].mxu0  ;;  %v2064_v11 = vld [vmem:[%s4019_s28 + $0x4] sm:$0xf] }
 0x358   : > { %v1677_v14 = vpop.f32.mrb[30].mxu0  ;;  %v2065_v13 = vld [vmem:[%s4019_s28 + $0x8] sm:$0xf] }
 0x359   : > { %v3031_v16 = vpop.f32.mrb[31].mxu0  ;;  %v1822_v17 = vsel %vm1633_vm3, %v1818_v12, -inf }
 0x35a   : > { %1823 = vmax.xlane.f32.xlu1 %v1822_v17  ;;  %v2163_v17 = vsel %vm1877_vm4, %v2065_v13, 0  ;;  %v2832_v13 = vld [vmem:[%s4022_s6] ss:$0 sm:$0xff] }
 0x35e   : > { %1826 = vmax.xlane.f32.xlu1 %v1825_v19  ;;  %v1766_v20 = vpop.f32.mrb[32].mxu0  ;;  %v2066_v19 = vld [vmem:[%s4019_s28 + $0xc] sm:$0xf] }
 0x35f   : > { %v1820_v21 = vmul.f32 0.35355338, %v1766_v20  ;;  %v3042_v22 = vpop.f32.mrb[33].mxu0 }
 0x360   : > { %v1769_v23 = vpop.f32.mrb[34].mxu0 }
 0x361   : > { %v3043_v24 = vpop.f32.mrb[35].mxu0  ;;  %v1828_v26 = vsel %vm1633_vm3, %v1820_v21, -inf }
 0x362   : > { %1832 = vmax.xlane.f32.xlu1 %v1831_v25  ;;  %1829 = vmax.xlane.f32.xlu0 %v1828_v26  ;;  %v2209_v24 = vsel %vm1877_vm4, %v2066_v19, 0  ;;  %v3226_v19 = vld [vmem:[%s3597_s19 + $0x8] sm:$0xff]  }
 0x3e7   : > { %v1824_v27 = vpop.xlane.xlu1 %1823 }
 0x3e8   : > { %v1834_v28 = vsub.f32 %v1818_v12, %v1824_v27  ;;  %v2117_v12 = vsel %vm1877_vm4, %v2064_v11, 0 }
 0x3ea   : > { %v1838_v29 = vmul.f32 1.442695, %v1834_v28 }
 0x3eb   : > { %v1827_v30 = vpop.xlane.xlu1 %1826 }
 0x3ec   : > { %3235 = vpow2.f32 %v1838_v29  ;;  %v1835_v31 = vsub.f32 %v1819_v15, %v1827_v30 }
 0x3ee   : > { %v1840_v32 = vmul.f32 1.442695, %v1835_v31 }
 0x3ef   : > { %v1833_v33 = vpop.xlane.xlu1 %1832  ;;  %v1830_v34 = vpop.xlane.xlu0 %1829 }
 0x3f0   : > { %3237 = vpow2.f32 %v1840_v32  ;;  %v1837_v35 = vsub.f32 %v1821_v18, %v1833_v33  ;;  %v1836_v36 = vsub.f32 %v1820_v21, %v1830_v34 }
 0x3f2   : > { %v1844_v37 = vmul.f32 1.442695, %v1837_v35  ;;  %v1842_v38 = vmul.f32 1.442695, %v1836_v36 }
 0x3f4   : > { %3239 = vpow2.f32 %v1844_v37 }
 0x3f5   : > { %3241 = vpow2.f32 %v1842_v38 }
 0x3f6   : > { %v3236_v40 = vpop.eup %3235 }
 0x3f7   : > { %v1846_v41 = vsel %vm1633_vm3, %v3236_v40, 0.0 }
 0x3f8   : > { %1847 = vadd.xlane.f32.xlu0 %v1846_v41 }
 0x3fa   : > { %v3238_v42 = vpop.eup %3237 }
 0x3fb   : > { %v1849_v44 = vsel %vm1633_vm3, %v3238_v42, 0.0 }
 0x3fc   : > { %1850 = vadd.xlane.f32.xlu1 %v1849_v44 }
 0x3fe   : > { %v3240_v45 = vpop.eup %3239 }
 0x3ff   : > { %v3242_v46 = vpop.eup %3241  ;;  %v1855_v47 = vsel %vm1633_vm3, %v3240_v45, 0.0 }
 0x400   : > { %1856 = vadd.xlane.f32.xlu1 %v1855_v47  ;;  %v1852_v48 = vsel %vm1633_vm3, %v3242_v46, 0.0 }
 0x401   : > { %1853 = vadd.xlane.f32.xlu0 %v1852_v48 }
 0x485   : > { %v1848_v43 = vpop.xlane.xlu0 %1847 }
 0x486   : > { %3243 = vrcp.f32 %v1848_v43 }
 0x489   : > { %v1851_v49 = vpop.xlane.xlu1 %1850 }
 0x48a   : > { %3245 = vrcp.f32 %v1851_v49 }
 0x48d   : > { %v1857_v52 = vpop.xlane.xlu1 %1856 }
 0x48e   : > { %3247 = vrcp.f32 %v1857_v52  ;;  %v1854_v54 = vpop.xlane.xlu0 %1853 }
 0x48f   : > { %3249 = vrcp.f32 %v1854_v54 }
 0x490   : > { %v3244_v55 = vpop.eup %3243 }
 0x491   : > { %v1862_v58 = vmul.f32 %v3244_v55, %v3236_v40 }
 0x493   : > { %v1866_v59 = vpack.c.bf16 %v1862_v58, %v1862_v58 }
 0x494   : > { %v3246_v60 = vpop.eup %3245 }
 0x495   : > { %v1863_v0 = vmul.f32 %v3246_v60, %v3238_v42  ;;  %3053 = vmatmul.mubr.msk.bf16.vlgmr.msra.gmra.mrb[36].mxu0 %vm1633_vm3, %v1866_v59 }
 0x496   : > { %3063 = vmatpush3.bf16.msra.mxu0 %v1971_v63  ;;  %3064 = vmatprep.mubr.msk.bf16.mxu0 %vm3352_vm2, %v3351_v10 }
 0x497   : > { %v1867_v61 = vpack.c.bf16 %v1863_v0, %v1863_v0  ;;  %3074 = vmatprep.subr.bf16.mxu0 %v3351_v10 }
 0x498   : > { %v3248_v2 = vpop.eup %3247 }
 0x499   : > { %v3250_v39 = vpop.eup %3249  ;;  %3059 = vmatmul.mubr.msk.bf16.vlgmr.msra.gmra.mrb[28].mxu1 %vm1633_vm3, %v1867_v61  ;;  %v1865_v6 = vmul.f32 %v3248_v2, %v3240_v45 }
 0x49a   : > { %v1864_v5 = vmul.f32 %v3250_v39, %v3242_v46  ;;  %3069 = vmatpush3.bf16.msra.mxu1 %v2017_v3  ;;  %3070 = vmatprep.mubr.msk.bf16.mxu1 %vm3352_vm2, %v3351_v10 }
 0x49b   : > { %3080 = vmatprep.subr.bf16.mxu1 %v3351_v10  ;;  %v1869_v9 = vpack.c.bf16 %v1865_v6, %v1865_v6  ;;  %v3223_v6 = vld [vmem:[%s3588_s8] sm:$0xff]  }
 0x49c   : > { %v1868_v7 = vpack.c.bf16 %v1864_v5, %v1864_v5 }
 0x49e   : > { %3065 = vmatmul.mubr.msk.bf16.vlgmr.msra.gmra.mrb[40].mxu0 %vm1633_vm3, %v1868_v7  ;;  %v3224_v7 = vld [vmem:[%s3588_s8 + $0x8] sm:$0xff]  }
 0x49f   : > { %3075 = vmatpush3.bf16.msra.mxu0 %v2071_v8  ;;  %3076 = vmatprep.mubr.msk.bf16.mxu0 %vm3352_vm2, %v3351_v10 }
 0x4a0   : > { %3086 = vmatprep.subr.bf16.mxu0 %v3351_v10 }
 0x4a1   : > { %3071 = vmatmul.mubr.msk.bf16.vlgmr.msra.gmra.mrb[32].mxu1 %vm1633_vm3, %v1869_v9 }
 0x4a2   : > { %3082 = vmatprep.mubr.msk.bf16.mxu1 %vm3352_vm2, %v3351_v10  ;;  %3081 = vmatpush3.bf16.msra.mxu1 %v2117_v12 }
 0x4a3   : > { %3092 = vmatprep.subr.bf16.mxu1 %v3351_v10 }
 0x568   : > { %v1915_v14 = vpop.f32.mrb[36].mxu0 }
 0x569   : > { %v2059_v15 = vpack.c.bf16 %v1915_v14, %v1915_v14  ;;  %v3054_v16 = vpop.f32.mrb[37].mxu0 }
 0x56a   : > { %v1918_v18 = vpop.f32.mrb[38].mxu0 }
 0x56b   : > { %v3055_v20 = vpop.f32.mrb[39].mxu0  ;;  %3077 = vmatmul.mubr.msk.bf16.vlgmr.msra.gmra.mrb[44].mxu0 %vm1633_vm3, %v2059_v15  ;;  %v2833_v15 = vld [vmem:[%s808_s2] ss:$0 sm:$0xff] }
 0x56c   : > { %v1961_v21 = vpop.f32.mrb[28].mxu1  ;;  %3087 = vmatpush3.bf16.msra.mxu0 %v2163_v17  ;;  %3088 = vmatprep.mubr.msk.bf16.mxu0 %vm3352_vm2, %v3351_v10  ;;  %v3227_v20 = vld [vmem:[%s3597_s19 + $0x10] sm:$0xff]  }
 0x56d   : > { %v2060_v22 = vpack.c.bf16 %v1961_v21, %v1961_v21  ;;  %v3060_v23 = vpop.f32.mrb[29].mxu1  ;;  %3098 = vmatprep.subr.bf16.mxu0 %v3351_v10  ;;  %v3228_v21 = vld [vmem:[%s3597_s19 + $0x18] sm:$0xff]  }
 0x56e   : > { %v1964_v25 = vpop.f32.mrb[30].mxu1  ;;  %v3230_v23 = vld [vmem:[%s3597_s19 + $0x28] sm:$0xff]  }
 0x56f   : > { %v3061_v26 = vpop.f32.mrb[31].mxu1  ;;  %3083 = vmatmul.mubr.msk.bf16.vlgmr.msra.gmra.mrb[36].mxu1 %vm1633_vm3, %v2060_v22  ;;  %v3229_v22 = vld [vmem:[%s3597_s19 + $0x20] sm:$0xff]   ;;  %v3232_v25 = vld [vmem:[%s3597_s19 + $0x38] sm:$0xff]  }
 0x570   : > { %3093 = vmatpush3.bf16.msra.mxu1 %v2209_v24  ;;  %3094 = vmatprep.mubr.msk.bf16.mxu1 %vm3352_vm2, %v3351_v10  ;;  %v3231_v24 = vld [vmem:[%s3597_s19 + $0x30] sm:$0xff]   ;;  %v2834_v26 = vld [vmem:[%s816_s9] ss:$0 sm:$0xff] }
 0x571   : > { %v2007_v27 = vpop.f32.mrb[40].mxu0  ;;  %3106 = vmatprep.subr.bf16.mxu1 %v3351_v10 }
 0x572   : > { %v2061_v28 = vpack.c.bf16 %v2007_v27, %v2007_v27  ;;  %v3066_v29 = vpop.f32.mrb[41].mxu0 }
 0x573   : > { %v2010_v30 = vpop.f32.mrb[42].mxu0 }
 0x574   : > { %v3067_v31 = vpop.f32.mrb[43].mxu0  ;;  %3089 = vmatmul.mubr.msk.bf16.vlgmr.msra.gmra.mrb[48].mxu0 %vm1633_vm3, %v2061_v28  ;;  %v2053_v32 = vpop.f32.mrb[32].mxu1 }
 0x575   : > { %v2062_v33 = vpack.c.bf16 %v2053_v32, %v2053_v32  ;;  %v3072_v34 = vpop.f32.mrb[33].mxu1  ;;  %3102 = vmatprep.mubr.msk.bf16.mxu0 %vm3352_vm2, %v3351_v10  ;;  %3099 = vmatpush3.bf16.msra.mxu0 %v3223_v6 }
 0x576   : > { %v2056_v35 = vpop.f32.mrb[34].mxu1  ;;  %3100 = vmatprep.subr.bf16.mxu0 %v3351_v10 }
 0x577   : > { %v3073_v36 = vpop.f32.mrb[35].mxu1  ;;  %3095 = vmatmul.mubr.msk.bf16.vlgmr.msra.gmra.mrb[40].mxu1 %vm1633_vm3, %v2062_v33 }
 0x578   : > { %3122 = vmatprep.mubr.msk.bf16.mxu1 %vm3352_vm2, %v3351_v10 }
 0x579   : > { %3101 = vmatpush3.bf16.msra.mxu0 %v3224_v7 }
 0x63e   : > { %v2107_v37 = vpop.f32.mrb[44].mxu0 }
 0x63f   : > { %v3078_v38 = vpop.f32.mrb[45].mxu0  ;;  %v2251_v44 = vsel %vm836_vm1, %v2107_v37, 0.0 }
 0x640   : > { %v2110_v40 = vpop.f32.mrb[46].mxu0 }
 0x641   : > { %v3079_v41 = vpop.f32.mrb[47].mxu0 }
 0x642   : > { %v2153_v42 = vpop.f32.mrb[36].mxu1 }
 0x643   : > { %v2252_v45 = vsel %vm836_vm1, %v2153_v42, 0.0  ;;  %v3084_v46 = vpop.f32.mrb[37].mxu1  ;;  %v2838_v42 = vld [vmem:[%s824_s11] ss:$0 sm:$0xff] }
 0x644   : > { %v2253_v47 = vadd.f32 %v2252_v45, %v2251_v44  ;;  %v2156_v48 = vpop.f32.mrb[38].mxu1 }
 0x645   : > { %v3085_v43 = vpop.f32.mrb[39].mxu1 }
 0x647   : > { %v2199_v49 = vpop.f32.mrb[48].mxu0 }
 0x648   : > { %v2254_v50 = vsel %vm836_vm1, %v2199_v49, 0.0  ;;  %v3090_v51 = vpop.f32.mrb[49].mxu0 }
 0x649   : > { %v2255_v52 = vadd.f32 %v2254_v50, %v2253_v47  ;;  %v2202_v53 = vpop.f32.mrb[50].mxu0 }
 0x64a   : > { %v3091_v54 = vpop.f32.mrb[51].mxu0  ;;  %v2245_v55 = vpop.f32.mrb[40].mxu1 }
 0x64b   : > { %v2256_v56 = vsel %vm836_vm1, %v2245_v55, 0.0  ;;  %v3096_v58 = vpop.f32.mrb[41].mxu1 }
 0x64c   : > { %v2257_v59 = vadd.f32 %v2256_v56, %v2255_v52  ;;  %v2248_v60 = vpop.f32.mrb[42].mxu1 }
 0x64d   : > { %v3097_v62 = vpop.f32.mrb[43].mxu1 }
 0x64e   : > { %v2265_v63 = vadd.f32 %v2831_v57, %v2257_v59 }
 0x650   : > { %v3828_v0 = vadd.f32 %v2265_v63, %v3605_v1  ;;  %v3225_v1 = vld [vmem:[%s3597_s19] sm:$0xff]  }
 0x651   : > { %3107 = vmatpush3.bf16.msra.mxu1 %v3225_v1 }
 0x652   : > { %v2269_v61 = vsel %vm836_vm1, %v3828_v0, 0.0  ;;  %3108 = vmatprep.subr.bf16.mxu1 %v3351_v10 }
 0x653   : > { %2270 = vadd.xlane.f32.xlu0 %v2269_v61 }
 0x655   : > { %3109 = vmatpush3.bf16.msra.mxu1 %v3226_v19 }
 0x656   : > { %3110 = vmatprep.subr.bf16.mxu1 %v3351_v10 }
 0x659   : > { %3111 = vmatpush3.bf16.msra.mxu1 %v3227_v20 }
 0x65a   : > { %3112 = vmatprep.subr.bf16.mxu1 %v3351_v10 }
 0x65d   : > { %3113 = vmatpush3.bf16.msra.mxu1 %v3228_v21 }
 0x65e   : > { %3114 = vmatprep.subr.bf16.mxu1 %v3351_v10 }
 0x661   : > { %3115 = vmatpush3.bf16.msra.mxu1 %v3229_v22 }
 0x662   : > { %3116 = vmatprep.subr.bf16.mxu1 %v3351_v10 }
 0x665   : > { %3117 = vmatpush3.bf16.msra.mxu1 %v3230_v23 }
 0x666   : > { %3118 = vmatprep.subr.bf16.mxu1 %v3351_v10 }
 0x669   : > { %3119 = vmatpush3.bf16.msra.mxu1 %v3231_v24 }
 0x66a   : > { %3120 = vmatprep.subr.bf16.mxu1 %v3351_v10 }
 0x66d   : > { %3121 = vmatpush3.bf16.msra.mxu1 %v3232_v25 }
 0x6e0   : > { %v2271_v2 = vpop.xlane.xlu0 %2270 }
 0x6e1   : > { %v2272_v39 = vmul.f32 0.03125, %v2271_v2 }
 0x6e3   : > { %v2273_v3 = vsub.f32 %v3828_v0, %v2272_v39 }
 0x6e5   : > { %v2274_v4 = vmul.f32 %v2273_v3, %v2273_v3 }
 0x6e7   : > { %v2275_v5 = vsel %vm836_vm1, %v2274_v4, 0.0 }
 0x6e8   : > { %2276 = vadd.xlane.f32.xlu1 %v2275_v5 }
 0x775   : > { %v2277_v8 = vpop.xlane.xlu1 %2276 }
 0x776   : > { %v2278_v9 = vmul.f32 0.03125, %v2277_v8 }
 0x778   : > { %v2279_v11 = vadd.f32 1e-05, %v2278_v9 }
 0x77a   : > { %3251 = vrsqrt.f32 %v2279_v11 }
 0x784   : > { %v3252_v12 = vpop.eup %3251 }
 0x785   : > { %v2281_v14 = vmul.f32 %v3252_v12, %v2273_v3 }
 0x787   : > { %v2288_v16 = vmul.f32 %v2832_v13, %v2281_v14 }
 0x789   : > { %v2295_v17 = vadd.f32 %v2833_v15, %v2288_v16 }
 0x78b   : > { %v2296_v18 = vpack.c.bf16 %v2295_v17, %v2295_v17 }
 0x78d   : > { %3103 = vmatmul.mubr.msk.bf16.vlgmr.msra.gmra.mrb[52].mxu0 %vm836_vm1, %v2296_v18 }
 0x860   : > { %v2357_v27 = vpop.f32.mrb[52].mxu0 }
 0x861   : > { %v2358_v28 = vadd.f32 %v2834_v26, %v2357_v27  ;;  %v3104_v29 = vpop.f32.mrb[53].mxu0 }
 0x862   : > { %v2360_v30 = vpop.f32.mrb[54].mxu0 }
 0x863   : > { %v2364_v31 = vmul.f32 0.044715, %v2358_v28  ;;  %v3105_v32 = vpop.f32.mrb[55].mxu0  ;;  %v2363_v10 = vmul.f32 0.5, %v2358_v28 }
 0x865   : > { %v2365_v33 = vmul.f32 %v2364_v31, %v2358_v28 }
 0x867   : > { %v2366_v34 = vmul.f32 %v2365_v33, %v2358_v28 }
 0x869   : > { %v2367_v35 = vadd.f32 %v2366_v34, %v2358_v28 }
 0x86b   : > { %v2368_v36 = vmul.f32 0.7978846, %v2367_v35 }
 0x86d   : > { %3253 = vtanh.f32 %v2368_v36 }
 0x877   : > { %v3254_v37 = vpop.eup %3253 }
 0x878   : > { %v2370_v38 = vadd.f32 1.0, %v3254_v37 }
 0x87a   : > { %v2371_v40 = vmul.f32 %v2370_v38, %v2363_v10 }
 0x87c   : > { %v2372_v41 = vpack.c.bf16 %v2371_v40, %v2371_v40 }
 0x87e   : > { %3123 = vmatmul.mubr.bf16.vlgmr.msra.gmra.mrb[44].mxu1 %v2372_v41 }
 0x950   : > { %2489 = sbr.rel (%p2847_p1) target bundleno = 2391 (0x957), region = 96 }
 0x951   : > { %v2478_v44 = vpop.f32.mrb[44].mxu1 }
 0x952   : > { %v2479_v45 = vadd.f32 %v2838_v42, %v2478_v44  ;;  %v3124_v46 = vpop.f32.mrb[45].mxu1 }
 0x953   : > { %v2481_v47 = vpop.f32.mrb[46].mxu1 }
 0x954   : > { %v2484_v48 = vadd.f32 %v2479_v45, %v3828_v0  ;;  %v3125_v43 = vpop.f32.mrb[47].mxu1 }
 0x956   : > { %2485 = vst.msk [vmem:[#allocation2] sm:$0xff] %vm836_vm1, %v2484_v48  ;;  %2490 = vst.msk [vmem:[%s757_s7] sm:$0xff] (!%p2847_p1), %vm836_vm1, %v2484_v48 }
 0x957 PF: > { %s4025_s0 = sld [smem:[#allocation10_spill]]  ;;  %s4026_s11 = sld [smem:[#allocation7_spill]] }
 0x958   : > { %s4028_s20 = sld [smem:[#allocation34_spill]]  ;;  %s2505_s17 = sshll.u32 %s757_s7, 4  ;;  %s2506_s17 = int_to_ptr.vmem [resolvable:$true] %s2505_s17 }
 0x959   : > { %s3255_s25 = scalar_lea.vmem %s2506_s17, 128  ;;  %s3353_s18 = smov [#allocation3]  }
 0x95a   : > { %p3256_p2 = scmp.ne.s32.totalorder %s2506_s17, %s3255_s25  ;;  %s3259_s26 = sshll.u32 %s3353_s18, 4  ;;  %s3260_s26 = int_to_ptr.vmem [resolvable:$false] %s3259_s26 }
 0x95b   : > { %s3261_s5 = scalar_lea.vmem %s3260_s26, 256  ;;  %p3262_p6 = scmp.lt.s32.totalorder %s2506_s17, %s3260_s26 }
 0x95c   : > { %p3257_p4 = pnand %p3256_p2, %p3493_p3  ;;  %p3263_p7 = scmp.lt.s32.totalorder %s3261_s5, %s3255_s25 }
 0x95d   : > { %s2849_s30 = sshll.u32 %s4025_s0, 7  ;;  %s4029_s28 = sand.u32 1, %s4026_s11  }
 0x95e   : > { %s3883_s4 = scalar_lea.hbm %s4028_s20, %s2849_s30  ;;  %s2492_s22 = scalar_lea.sflag [#allocation4], %s4029_s28 }
 0x95f   : > { %p3258_p5 = pneg %p3257_p4  ;;  %p3264_p8 = por %p3263_p7, %p3262_p6 }
 0x961   : > { %p3265_p10 = pnand %p3264_p8, %p3258_p5 }
 0x963   : > { %3268 = shalt.err (!%p3265_p10)
}
 0x964   : > { %s3269_s29 = scalar_lea.hbm %s3883_s4, 128  ;;  %s3273_s6 = scalar_lea.hbm %s4028_s20, 256 }
 0x965   : > { %p3270_p11 = scmp.ne.s32.totalorder %s3883_s4, %s3269_s29  ;;  %p3274_p0 = scmp.lt.u32.totalorder %s3883_s4, %s4028_s20 }
 0x966   : > { %p3275_p1 = scmp.lt.u32.totalorder %s3273_s6, %s3269_s29  ;;  %p3277_p4 = scmp.lt.u32.totalorder %s3269_s29, %s3883_s4 }
 0x967   : > { %p3271_p12 = pnand %p3270_p11, %p3493_p3 }
 0x968   : > { %p3276_p2 = por %p3275_p1, %p3274_p0 }
 0x969   : > { %p3272_p13 = pneg %p3271_p12 }
 0x96a   : > { %p3278_p5 = por %p3277_p4, %p3276_p2 }
 0x96c   : > { %p3279_p6 = pnand %p3278_p5, %p3272_p13 }
 0x96e   : > { %3282 = shalt.err (!%p3279_p6)
}
 0x96f   : > { %3126 = dma.vmem_to_hbm [thread:$0]  (%p3493_p3), %s2506_s17, 128, %s3883_s4, %s2492_s22  }
 0x970 PF: > { %s4030_s2 = sld [smem:[#allocation13_spill]]  ;;  %s4031_s16 = sld [smem:[#allocation6_spill]] }
 0x976   : > { %p3132_p7 = scmp.ge.s32.totalorder %s4030_s2, 2  ;;  %s2517_s9 = sand.u32 1, %s4031_s16  }
 0x977   : > { %s2518_s27 = scalar_lea.sflag [#allocation4], %s2517_s9 }
 0x978   : > { %p3129_p8 = pnand %p3132_p7, %p3503_p9 }
 0x97a   : > { %3316 = dma.done.wait (!%p3129_p8), %s2518_s27, 128  }
 0x97b   : > { %3318 = vsyncadd (!%p3129_p8), %s2518_s27, 4294967168  ;;  %s30_s30 = sadd.s32 1, %s4030_s2   ;;  %s4033_s24 = sld [smem:[#allocation7_spill]] }
 0x97c   : > { %p27_p10 = scmp.ge.s32.totalorder %s30_s30, 6   ;;  %s4034_s25 = sld [smem:[#allocation8_spill]] }
 0x97d   : > { %s4035_s26 = sld [smem:[#allocation18_spill]]  ;;  %s4036_s27 = sld [smem:[#allocation11_spill]] }
 0x97e   : > { %s4037_s28 = sld [smem:[#allocation12_spill]]  ;;  %s4038_s29 = sld [smem:[#allocation14_spill]] }
 0x97f   : > { %s4039_s0 = sld [smem:[#allocation16_spill]]  ;;  %29 = sbr.rel (!%p27_p10) target bundleno = 20 (0x14), region = 179 }
 0x986   :  { %2523 = vsyncpa [#allocation4], 1 }
 0x987   :  { %2525 = vsyncpa [#allocation4 + $0x1], 1 }

</bundles_post_ra>
